<compile_context>
chip_gen: v7x
topology: tpu7x:2x2x1
jax: 0.10.0
libtpu: 0.0.40
codegen_flags: <defaults>
</compile_context>

<pallas_src>
import math
import functools

import jax
import jax.numpy as jnp
import numpy as np
from jax.experimental import pallas as pl
from jax.experimental.pallas import tpu as pltpu


# ----------------------------------------------------------------------------
# Pallas kernel: one (batch element, query tile) per grid step.
# ----------------------------------------------------------------------------
def _encoder_layer_kernel(
    x_ref,                                   # (1, S, D)  f32   full sequence
    wqkv_ref,                                # (D, 3D)    bf16  fused Q|K|V weights
    bqkv_ref,                                # (1, 3D)    f32   fused Q|K|V biases
    wo_ref,                                  # (D, D)     bf16  output projection
    pdm_ref,                                 # (6, D)     f32   [bo, ln1_g, ln1_b, b2, ln2_g, ln2_b]
    w1_ref,                                  # (D, F)     bf16
    b1_ref,                                  # (1, F)     f32
    w2_ref,                                  # (F, D)     bf16
    o_ref,                                   # (1, TQ, D) f32
    kv_ref,                                  # (S, 2D)    bf16  scratch: resident K|V
    *, num_heads: int, depth: int, tq: int, eps: float = 1e-5,
):
    S = x_ref.shape[1]
    D = num_heads * depth
    qi = pl.program_id(1)

    # --- K/V projection: computed once per batch element (qi == 0), reused for all qi ---
    @pl.when(qi == 0)
    def _():
        xb = x_ref[0].astype(jnp.bfloat16)                       # (S, D)
        k = jnp.dot(xb, wqkv_ref[:, D:2 * D],
                    preferred_element_type=jnp.float32) + bqkv_ref[:, D:2 * D]
        kv_ref[:, :D] = k.astype(jnp.bfloat16)
        v = jnp.dot(xb, wqkv_ref[:, 2 * D:],
                    preferred_element_type=jnp.float32) + bqkv_ref[:, 2 * D:]
        kv_ref[:, D:] = v.astype(jnp.bfloat16)

    # --- Q projection for this query tile (sliced from the resident x block) ---
    row0 = pl.multiple_of(qi * tq, tq)
    x_q = x_ref[0, pl.ds(row0, tq), :]                           # (TQ, D) f32
    q = jnp.dot(x_q.astype(jnp.bfloat16), wqkv_ref[:, :D],
                preferred_element_type=jnp.float32) + bqkv_ref[:, :D]
    q_b = q.astype(jnp.bfloat16)                                 # (TQ, D)
    k_b = kv_ref[:, :D]                                          # (S, D) bf16
    v_b = kv_ref[:, D:]                                          # (S, D) bf16

    # --- per-head attention (scores / softmax / PV); heads assembled along lanes ---
    # TODO(synk): attention `mask` is not plumbed through (mask=None path only).
    scale = 1.0 / math.sqrt(float(depth))
    ctx_heads = []
    for h in range(num_heads):
        lo = h * depth
        qh = q_b[:, lo:lo + depth]                               # (TQ, dh)
        kh = k_b[:, lo:lo + depth]                               # (S, dh)
        vh = v_b[:, lo:lo + depth]                               # (S, dh)
        s = jax.lax.dot_general(                                 # (TQ, S): contract head dim
            qh, kh, (((1,), (1,)), ((), ())),
            preferred_element_type=jnp.float32) * scale
        s = s - jnp.max(s, axis=-1, keepdims=True)
        p = jnp.exp(s)
        p = p * pl.reciprocal(jnp.sum(p, axis=-1, keepdims=True), approx=True)
        ctx_heads.append(jnp.dot(p.astype(jnp.bfloat16), vh,
                                 preferred_element_type=jnp.float32))   # (TQ, dh)
    ctx = jnp.concatenate(ctx_heads, axis=-1)                    # (TQ, D) lane assembly

    # --- single full-width output projection (K = D on the MXU) ---
    attn_out = jnp.dot(ctx.astype(jnp.bfloat16), wo_ref[...],
                       preferred_element_type=jnp.float32) + pdm_ref[0:1, :]

    def layer_norm(t, gamma, beta):
        mu = jnp.mean(t, axis=-1, keepdims=True)
        var = jnp.mean((t - mu) * (t - mu), axis=-1, keepdims=True)
        return (t - mu) * jax.lax.rsqrt(var + eps) * gamma + beta

    # residual + LN1 (dropout == identity in eval mode)
    x1 = layer_norm(x_q + attn_out, pdm_ref[1:2, :], pdm_ref[2:3, :])

    # --- feed-forward network (bf16 MXU, f32 accumulate) ---
    # TODO(synk): tile the FFN over d_ff (extra F grid axis) for very large F on v7x.
    h1 = jnp.dot(x1.astype(jnp.bfloat16), w1_ref[...],
                 preferred_element_type=jnp.float32) + b1_ref[...]
    h1 = jnp.maximum(h1, 0.0)
    ffn_out = jnp.dot(h1.astype(jnp.bfloat16), w2_ref[...],
                      preferred_element_type=jnp.float32) + pdm_ref[3:4, :]

    # residual + LN2
    o_ref[0] = layer_norm(x1 + ffn_out, pdm_ref[4:5, :], pdm_ref[5:6, :])


# ----------------------------------------------------------------------------
# Wrapper
# ----------------------------------------------------------------------------
def _vmem_limit_bytes(S, D, F, tq):
    bf16, f32 = 2, 4
    weights = (D * 3 * D + D * D + D * F + F * D) * bf16     # single-buffered (Buffered(1))
    small = (3 * D + 6 * D + F) * f32
    kv_scr = S * 2 * D * bf16
    blocks = (S * D) * f32 * 2 + (tq * D) * f32 * 2          # x (double-buffered) + out
    interm = (S * 2 * D + tq * S + tq * F + 8 * tq * D) * f32
    est = weights + small + kv_scr + blocks + interm
    est = int(est * 1.5) + (4 << 20)
    try:
        cap = pltpu.get_tpu_info().vmem_capacity_bytes       # 64 MiB v7x, 128 MiB v5e/v6e
    except Exception:
        cap = 64 << 20                                       # conservative fallback
    return max(32 << 20, min(est, cap - (8 << 20)))


def encoder_layer(x, params, *, num_heads, q_tile=None):
    B, S, D = x.shape
    F = params["w1"].shape[1]
    assert D % num_heads == 0
    depth = D // num_heads

    if q_tile is None:
        if S <= 256:
            q_tile = S
        elif S % 256 == 0:
            q_tile = 256            # 256-row tiles match v6e/v7x 256x256 MXU cadence
        else:
            q_tile = 128
    assert S % q_tile == 0
    assert q_tile == S or q_tile % 8 == 0
    nq = S // q_tile

    # Fused QKV weights; matmul weights stored bf16 (biases / LN params stay f32).
    w_qkv = jnp.concatenate(
        [params["wq"], params["wk"], params["wv"]], axis=1).astype(jnp.bfloat16)
    b_qkv = jnp.concatenate([params["bq"], params["bk"], params["bv"]], axis=1)
    wo = params["wo"].astype(jnp.bfloat16)
    w1 = params["w1"].astype(jnp.bfloat16)
    w2 = params["w2"].astype(jnp.bfloat16)
    # Pack the six 1xD bias / LayerNorm vectors into one (6, D) array -> one DMA stream.
    pdm = jnp.concatenate([params["bo"], params["g1"], params["be1"],
                           params["b2"], params["g2"], params["be2"]], axis=0)

    kernel = functools.partial(
        _encoder_layer_kernel, num_heads=num_heads, depth=depth, tq=q_tile)

    def const_spec(shape):
        nd = len(shape)
        # Grid-invariant: single-buffered to halve resident-weight VMEM.
        return pl.BlockSpec(shape, lambda b, qi, _n=nd: (0,) * _n,
                            pipeline_mode=pl.Buffered(1))

    weight_inputs = [
        (w_qkv, (D, 3 * D)), (b_qkv, (1, 3 * D)),
        (wo, (D, D)), (pdm, (6, D)),
        (w1, (D, F)), (params["b1"], (1, F)),
        (w2, (F, D)),
    ]

    in_specs = [pl.BlockSpec((1, S, D), lambda b, qi: (b, 0, 0))]   # full sequence
    in_specs += [const_spec(shape) for _, shape in weight_inputs]

    return pl.pallas_call(
        kernel,
        out_shape=jax.ShapeDtypeStruct((B, S, D), jnp.float32),
        grid_spec=pltpu.PrefetchScalarGridSpec(
            num_scalar_prefetch=0,
            grid=(B, nq),
            in_specs=in_specs,
            out_specs=pl.BlockSpec((1, q_tile, D), lambda b, qi: (b, qi, 0)),
            scratch_shapes=[pltpu.VMEM((S, 2 * D), jnp.bfloat16)],   # resident K|V
        ),
        compiler_params=pltpu.CompilerParams(
            # qi MUST be "arbitrary": the KV scratch written at qi==0 is reused for
            # every later qi on the same core.  B stays "parallel" (megacore).
            dimension_semantics=("parallel", "arbitrary"),
            vmem_limit_bytes=_vmem_limit_bytes(S, D, F, q_tile),
        ),
    )(x, *[arr for arr, _ in weight_inputs])


# ----------------------------------------------------------------------------
# Pure-JAX reference (mirrors the PyTorch forward, eval mode, f32)
# ----------------------------------------------------------------------------
def encoder_layer_ref(x, params, *, num_heads):
    B, S, D = x.shape
    depth = D // num_heads

    def ln(t, g, b, eps=1e-5):
        mu = jnp.mean(t, axis=-1, keepdims=True)
        var = jnp.mean((t - mu) ** 2, axis=-1, keepdims=True)
        return (t - mu) / jnp.sqrt(var + eps) * g + b

    q = x @ params["wq"] + params["bq"]
    k = x @ params["wk"] + params["bk"]
    v = x @ params["wv"] + params["bv"]

    def split(t):  # (B,S,D) -> (B,H,S,depth)
        return t.reshape(B, S, num_heads, depth).transpose(0, 2, 1, 3)

    qh, kh, vh = split(q), split(k), split(v)
    scores = jnp.einsum("bhqd,bhkd->bhqk", qh, kh) / math.sqrt(depth)
    attn = jax.nn.softmax(scores, axis=-1)
    ctx = jnp.einsum("bhqk,bhkd->bhqd", attn, vh)
    ctx = ctx.transpose(0, 2, 1, 3).reshape(B, S, D)
    attn_out = ctx @ params["wo"] + params["bo"]

    x1 = ln(x + attn_out, params["g1"], params["be1"])
    h = jax.nn.relu(x1 @ params["w1"] + params["b1"])
    ffn_out = h @ params["w2"] + params["b2"]
    return ln(x1 + ffn_out, params["g2"], params["be2"])


# ----------------------------------------------------------------------------
# Deterministic parameter init (PyTorch nn.Linear-style uniform bounds)
# ----------------------------------------------------------------------------
def init_params(key, d_model, d_ff):
    keys = jax.random.split(key, 12)

    def linear(kw, kb, fan_in, fan_out):
        bound = 1.0 / math.sqrt(fan_in)
        w = jax.random.uniform(kw, (fan_in, fan_out), jnp.float32, -bound, bound)
        b = jax.random.uniform(kb, (1, fan_out), jnp.float32, -bound, bound)
        return w, b

    p = {}
    p["wq"], p["bq"] = linear(keys[0], keys[1], d_model, d_model)
    p["wk"], p["bk"] = linear(keys[2], keys[3], d_model, d_model)
    p["wv"], p["bv"] = linear(keys[4], keys[5], d_model, d_model)
    p["wo"], p["bo"] = linear(keys[6], keys[7], d_model, d_model)
    p["w1"], p["b1"] = linear(keys[8], keys[9], d_model, d_ff)
    p["w2"], p["b2"] = linear(keys[10], keys[11], d_ff, d_model)
    p["g1"] = jnp.ones((1, d_model), jnp.float32)
    p["be1"] = jnp.zeros((1, d_model), jnp.float32)
    p["g2"] = jnp.ones((1, d_model), jnp.float32)
    p["be2"] = jnp.zeros((1, d_model), jnp.float32)
    return p


if __name__ == "__main__":
    # D=128 keeps activation/output blocks lane-dense (multiple of 128);
    # q_tile=8 gives grid=(2, 2) and exercises the once-per-batch KV scratch reuse.
    B, S, d_model, num_heads, d_ff = 2, 16, 128, 4, 256

    key = jax.random.PRNGKey(0)
    kx, kp = jax.random.split(key)
    x = jax.random.normal(kx, (B, S, d_model), jnp.float32)
    params = init_params(kp, d_model, d_ff)

    out = encoder_layer(x, params, num_heads=num_heads, q_tile=8)
    out = jax.block_until_ready(out)

    ref = encoder_layer_ref(x, params, num_heads=num_heads)
    # bf16 matmuls + approx reciprocal vs. f32 reference -> relaxed tolerance.
    np.testing.assert_allclose(np.asarray(out), np.asarray(ref), atol=5e-2, rtol=5e-2)

    print("KERNEL_OK")
</pallas_src>

<mosaic_0001>
module attributes {stable_mosaic.version = 11 : i64} {
  func.func @_encoder_layer_kernel(%arg0: i32, %arg1: i32, %arg2: memref<1x16x128xf32, #tpu.memory_space<vmem>>, %arg3: memref<128x384xbf16, #tpu.memory_space<vmem>>, %arg4: memref<1x384xf32, #tpu.memory_space<vmem>>, %arg5: memref<128x128xbf16, #tpu.memory_space<vmem>>, %arg6: memref<6x128xf32, #tpu.memory_space<vmem>>, %arg7: memref<128x256xbf16, #tpu.memory_space<vmem>>, %arg8: memref<1x256xf32, #tpu.memory_space<vmem>>, %arg9: memref<256x128xbf16, #tpu.memory_space<vmem>>, %arg10: memref<1x8x128xf32, #tpu.memory_space<vmem>>, %arg11: memref<16x256xbf16, #tpu.memory_space<vmem>>) attributes {dimension_semantics = [#tpu.dimension_semantics<parallel>, #tpu.dimension_semantics<arbitrary>], iteration_bounds = array<i64: 2, 2>, scalar_prefetch = 0 : i64, scratch_operands = 1 : i64, tpu.core_type = #tpu.core_type<tc>, window_params = [{transform_indices = @transform_0, window_bounds = array<i64: 1, 16, 128>}, {pipeline_mode = #tpu.pipeline_mode<synchronous>, transform_indices = @transform_1, window_bounds = array<i64: 128, 384>}, {pipeline_mode = #tpu.pipeline_mode<synchronous>, transform_indices = @transform_2, window_bounds = array<i64: 1, 384>}, {pipeline_mode = #tpu.pipeline_mode<synchronous>, transform_indices = @transform_3, window_bounds = array<i64: 128, 128>}, {pipeline_mode = #tpu.pipeline_mode<synchronous>, transform_indices = @transform_4, window_bounds = array<i64: 6, 128>}, {pipeline_mode = #tpu.pipeline_mode<synchronous>, transform_indices = @transform_5, window_bounds = array<i64: 128, 256>}, {pipeline_mode = #tpu.pipeline_mode<synchronous>, transform_indices = @transform_6, window_bounds = array<i64: 1, 256>}, {pipeline_mode = #tpu.pipeline_mode<synchronous>, transform_indices = @transform_7, window_bounds = array<i64: 256, 128>}, {transform_indices = @transform_8, window_bounds = array<i64: 1, 8, 128>}]} {
    %c0_i32 = arith.constant 0 : i32
    %0 = arith.cmpi eq, %arg1, %c0_i32 : i32
    %1 = arith.extui %0 : i1 to i32
    %c0_i32_0 = arith.constant 0 : i32
    %2 = arith.cmpi ne, %1, %c0_i32_0 : i32
    scf.if %2 {
      %c0_61 = arith.constant 0 : index
      %c0_62 = arith.constant 0 : index
      %c0_63 = arith.constant 0 : index
      %167 = vector.load %arg2[%c0_61, %c0_62, %c0_63] : memref<1x16x128xf32, #tpu.memory_space<vmem>>, vector<1x16x128xf32>
      %168 = vector.shape_cast %167 : vector<1x16x128xf32> to vector<16x128xf32>
      %169 = arith.truncf %168 : vector<16x128xf32> to vector<16x128xbf16>
      %c0_64 = arith.constant 0 : index
      %c128_65 = arith.constant 128 : index
      %170 = vector.load %arg3[%c0_64, %c128_65] : memref<128x384xbf16, #tpu.memory_space<vmem>>, vector<128x128xbf16>
      %cst_66 = arith.constant dense<0.000000e+00> : vector<16x128xf32>
      %171 = tpu.matmul %169, %170, %cst_66 {dimension_numbers = #tpu.dot_dimension_numbers<[1], [0], [0], [1], [0, 0, 1, 1], [], []>} : vector<16x128xbf16>, vector<128x128xbf16>, vector<16x128xf32> -> vector<16x128xf32>
      %c0_67 = arith.constant 0 : index
      %c128_68 = arith.constant 128 : index
      %172 = vector.load %arg4[%c0_67, %c128_68] : memref<1x384xf32, #tpu.memory_space<vmem>>, vector<1x128xf32>
      %173 = vector.broadcast %172 : vector<1x128xf32> to vector<16x128xf32>
      %174 = arith.addf %171, %173 : vector<16x128xf32>
      %175 = arith.truncf %174 : vector<16x128xf32> to vector<16x128xbf16>
      %c0_69 = arith.constant 0 : index
      %c0_70 = arith.constant 0 : index
      %176 = vector.load %arg11[%c0_69, %c0_70] : memref<16x256xbf16, #tpu.memory_space<vmem>>, vector<16x128xbf16>
      tpu.vector_store %arg11[%c0_69, %c0_70], %175 {strides = array<i32>} : memref<16x256xbf16, #tpu.memory_space<vmem>>, vector<16x128xbf16>,
      %c0_71 = arith.constant 0 : index
      %c256 = arith.constant 256 : index
      %177 = vector.load %arg3[%c0_71, %c256] : memref<128x384xbf16, #tpu.memory_space<vmem>>, vector<128x128xbf16>
      %cst_72 = arith.constant dense<0.000000e+00> : vector<16x128xf32>
      %178 = tpu.matmul %169, %177, %cst_72 {dimension_numbers = #tpu.dot_dimension_numbers<[1], [0], [0], [1], [0, 0, 1, 1], [], []>} : vector<16x128xbf16>, vector<128x128xbf16>, vector<16x128xf32> -> vector<16x128xf32>
      %c0_73 = arith.constant 0 : index
      %c256_74 = arith.constant 256 : index
      %179 = vector.load %arg4[%c0_73, %c256_74] : memref<1x384xf32, #tpu.memory_space<vmem>>, vector<1x128xf32>
      %180 = vector.broadcast %179 : vector<1x128xf32> to vector<16x128xf32>
      %181 = arith.addf %178, %180 : vector<16x128xf32>
      %182 = arith.truncf %181 : vector<16x128xf32> to vector<16x128xbf16>
      %c0_75 = arith.constant 0 : index
      %c128_76 = arith.constant 128 : index
      %183 = vector.load %arg11[%c0_75, %c128_76] : memref<16x256xbf16, #tpu.memory_space<vmem>>, vector<16x128xbf16>
      tpu.vector_store %arg11[%c0_75, %c128_76], %182 {strides = array<i32>} : memref<16x256xbf16, #tpu.memory_space<vmem>>, vector<16x128xbf16>,
    } else {
    }
    %c8_i32 = arith.constant 8 : i32
    %3 = arith.muli %arg1, %c8_i32 : i32
    %4 = tpu.assume_multiple %3, 8 : i32
    %c0 = arith.constant 0 : index
    %5 = arith.index_cast %4 : i32 to index
    %c0_1 = arith.constant 0 : index
    %6 = vector.load %arg2[%c0, %5, %c0_1] : memref<1x16x128xf32, #tpu.memory_space<vmem>>, vector<1x8x128xf32>
    %7 = vector.shape_cast %6 : vector<1x8x128xf32> to vector<8x128xf32>
    %8 = arith.truncf %7 : vector<8x128xf32> to vector<8x128xbf16>
    %c0_2 = arith.constant 0 : index
    %c0_3 = arith.constant 0 : index
    %9 = vector.load %arg3[%c0_2, %c0_3] : memref<128x384xbf16, #tpu.memory_space<vmem>>, vector<128x128xbf16>
    %cst = arith.constant dense<0.000000e+00> : vector<8x128xf32>
    %10 = tpu.matmul %8, %9, %cst {dimension_numbers = #tpu.dot_dimension_numbers<[1], [0], [0], [1], [0, 0, 1, 1], [], []>} : vector<8x128xbf16>, vector<128x128xbf16>, vector<8x128xf32> -> vector<8x128xf32>
    %c0_4 = arith.constant 0 : index
    %c0_5 = arith.constant 0 : index
    %11 = vector.load %arg4[%c0_4, %c0_5] : memref<1x384xf32, #tpu.memory_space<vmem>>, vector<1x128xf32>
    %12 = vector.broadcast %11 : vector<1x128xf32> to vector<8x128xf32>
    %13 = arith.addf %10, %12 : vector<8x128xf32>
    %14 = arith.truncf %13 : vector<8x128xf32> to vector<8x128xbf16>
    %c0_6 = arith.constant 0 : index
    %c0_7 = arith.constant 0 : index
    %15 = vector.load %arg11[%c0_6, %c0_7] : memref<16x256xbf16, #tpu.memory_space<vmem>>, vector<16x128xbf16>
    %c0_8 = arith.constant 0 : index
    %c128 = arith.constant 128 : index
    %16 = vector.load %arg11[%c0_8, %c128] : memref<16x256xbf16, #tpu.memory_space<vmem>>, vector<16x128xbf16>
    %17 = vector.extract_strided_slice %14 {offsets = [0, 0], sizes = [8, 32], strides = [1, 1]} : vector<8x128xbf16> to vector<8x32xbf16>
    %18 = vector.extract_strided_slice %15 {offsets = [0, 0], sizes = [16, 32], strides = [1, 1]} : vector<16x128xbf16> to vector<16x32xbf16>
    %19 = vector.extract_strided_slice %16 {offsets = [0, 0], sizes = [16, 32], strides = [1, 1]} : vector<16x128xbf16> to vector<16x32xbf16>
    %cst_9 = arith.constant dense<0.000000e+00> : vector<8x16xf32>
    %20 = tpu.matmul %17, %18, %cst_9 {dimension_numbers = #tpu.dot_dimension_numbers<[1], [1], [0], [0], [0, 0, 1, 0], [], []>} : vector<8x32xbf16>, vector<16x32xbf16>, vector<8x16xf32> -> vector<8x16xf32>
    %cst_10 = arith.constant 0.176776692 : f32
    %21 = vector.broadcast %cst_10 : f32 to vector<8x16xf32>
    %22 = arith.mulf %20, %21 : vector<8x16xf32>
    %cst_11 = arith.constant dense<0xFF800000> : vector<8xf32>
    %23 = vector.multi_reduction <maximumf>, %22, %cst_11 [1] : vector<8x16xf32> to vector<8xf32>
    %24 = vector.shape_cast %23 : vector<8xf32> to vector<8x1xf32>
    %25 = vector.broadcast %24 : vector<8x1xf32> to vector<8x16xf32>
    %26 = arith.subf %22, %25 : vector<8x16xf32>
    %27 = math.exp %26 : vector<8x16xf32>
    %cst_12 = arith.constant dense<0.000000e+00> : vector<8xf32>
    %28 = vector.multi_reduction <add>, %27, %cst_12 [1] : vector<8x16xf32> to vector<8xf32>
    %29 = vector.shape_cast %28 : vector<8xf32> to vector<8x1xf32>
    %30 = tpu.reciprocal %29 {approx = true} : vector<8x1xf32> -> vector<8x1xf32>
    %31 = vector.broadcast %30 : vector<8x1xf32> to vector<8x16xf32>
    %32 = arith.mulf %27, %31 : vector<8x16xf32>
    %33 = arith.truncf %32 : vector<8x16xf32> to vector<8x16xbf16>
    %cst_13 = arith.constant dense<0.000000e+00> : vector<8x32xf32>
    %34 = tpu.matmul %33, %19, %cst_13 {dimension_numbers = #tpu.dot_dimension_numbers<[1], [0], [0], [1], [0, 0, 1, 1], [], []>} : vector<8x16xbf16>, vector<16x32xbf16>, vector<8x32xf32> -> vector<8x32xf32>
    %35 = vector.extract_strided_slice %14 {offsets = [0, 32], sizes = [8, 32], strides = [1, 1]} : vector<8x128xbf16> to vector<8x32xbf16>
    %36 = vector.extract_strided_slice %15 {offsets = [0, 32], sizes = [16, 32], strides = [1, 1]} : vector<16x128xbf16> to vector<16x32xbf16>
    %37 = vector.extract_strided_slice %16 {offsets = [0, 32], sizes = [16, 32], strides = [1, 1]} : vector<16x128xbf16> to vector<16x32xbf16>
    %cst_14 = arith.constant dense<0.000000e+00> : vector<8x16xf32>
    %38 = tpu.matmul %35, %36, %cst_14 {dimension_numbers = #tpu.dot_dimension_numbers<[1], [1], [0], [0], [0, 0, 1, 0], [], []>} : vector<8x32xbf16>, vector<16x32xbf16>, vector<8x16xf32> -> vector<8x16xf32>
    %cst_15 = arith.constant 0.176776692 : f32
    %39 = vector.broadcast %cst_15 : f32 to vector<8x16xf32>
    %40 = arith.mulf %38, %39 : vector<8x16xf32>
    %cst_16 = arith.constant dense<0xFF800000> : vector<8xf32>
    %41 = vector.multi_reduction <maximumf>, %40, %cst_16 [1] : vector<8x16xf32> to vector<8xf32>
    %42 = vector.shape_cast %41 : vector<8xf32> to vector<8x1xf32>
    %43 = vector.broadcast %42 : vector<8x1xf32> to vector<8x16xf32>
    %44 = arith.subf %40, %43 : vector<8x16xf32>
    %45 = math.exp %44 : vector<8x16xf32>
    %cst_17 = arith.constant dense<0.000000e+00> : vector<8xf32>
    %46 = vector.multi_reduction <add>, %45, %cst_17 [1] : vector<8x16xf32> to vector<8xf32>
    %47 = vector.shape_cast %46 : vector<8xf32> to vector<8x1xf32>
    %48 = tpu.reciprocal %47 {approx = true} : vector<8x1xf32> -> vector<8x1xf32>
    %49 = vector.broadcast %48 : vector<8x1xf32> to vector<8x16xf32>
    %50 = arith.mulf %45, %49 : vector<8x16xf32>
    %51 = arith.truncf %50 : vector<8x16xf32> to vector<8x16xbf16>
    %cst_18 = arith.constant dense<0.000000e+00> : vector<8x32xf32>
    %52 = tpu.matmul %51, %37, %cst_18 {dimension_numbers = #tpu.dot_dimension_numbers<[1], [0], [0], [1], [0, 0, 1, 1], [], []>} : vector<8x16xbf16>, vector<16x32xbf16>, vector<8x32xf32> -> vector<8x32xf32>
    %53 = vector.extract_strided_slice %14 {offsets = [0, 64], sizes = [8, 32], strides = [1, 1]} : vector<8x128xbf16> to vector<8x32xbf16>
    %54 = vector.extract_strided_slice %15 {offsets = [0, 64], sizes = [16, 32], strides = [1, 1]} : vector<16x128xbf16> to vector<16x32xbf16>
    %55 = vector.extract_strided_slice %16 {offsets = [0, 64], sizes = [16, 32], strides = [1, 1]} : vector<16x128xbf16> to vector<16x32xbf16>
    %cst_19 = arith.constant dense<0.000000e+00> : vector<8x16xf32>
    %56 = tpu.matmul %53, %54, %cst_19 {dimension_numbers = #tpu.dot_dimension_numbers<[1], [1], [0], [0], [0, 0, 1, 0], [], []>} : vector<8x32xbf16>, vector<16x32xbf16>, vector<8x16xf32> -> vector<8x16xf32>
    %cst_20 = arith.constant 0.176776692 : f32
    %57 = vector.broadcast %cst_20 : f32 to vector<8x16xf32>
    %58 = arith.mulf %56, %57 : vector<8x16xf32>
    %cst_21 = arith.constant dense<0xFF800000> : vector<8xf32>
    %59 = vector.multi_reduction <maximumf>, %58, %cst_21 [1] : vector<8x16xf32> to vector<8xf32>
    %60 = vector.shape_cast %59 : vector<8xf32> to vector<8x1xf32>
    %61 = vector.broadcast %60 : vector<8x1xf32> to vector<8x16xf32>
    %62 = arith.subf %58, %61 : vector<8x16xf32>
    %63 = math.exp %62 : vector<8x16xf32>
    %cst_22 = arith.constant dense<0.000000e+00> : vector<8xf32>
    %64 = vector.multi_reduction <add>, %63, %cst_22 [1] : vector<8x16xf32> to vector<8xf32>
    %65 = vector.shape_cast %64 : vector<8xf32> to vector<8x1xf32>
    %66 = tpu.reciprocal %65 {approx = true} : vector<8x1xf32> -> vector<8x1xf32>
    %67 = vector.broadcast %66 : vector<8x1xf32> to vector<8x16xf32>
    %68 = arith.mulf %63, %67 : vector<8x16xf32>
    %69 = arith.truncf %68 : vector<8x16xf32> to vector<8x16xbf16>
    %cst_23 = arith.constant dense<0.000000e+00> : vector<8x32xf32>
    %70 = tpu.matmul %69, %55, %cst_23 {dimension_numbers = #tpu.dot_dimension_numbers<[1], [0], [0], [1], [0, 0, 1, 1], [], []>} : vector<8x16xbf16>, vector<16x32xbf16>, vector<8x32xf32> -> vector<8x32xf32>
    %71 = vector.extract_strided_slice %14 {offsets = [0, 96], sizes = [8, 32], strides = [1, 1]} : vector<8x128xbf16> to vector<8x32xbf16>
    %72 = vector.extract_strided_slice %15 {offsets = [0, 96], sizes = [16, 32], strides = [1, 1]} : vector<16x128xbf16> to vector<16x32xbf16>
    %73 = vector.extract_strided_slice %16 {offsets = [0, 96], sizes = [16, 32], strides = [1, 1]} : vector<16x128xbf16> to vector<16x32xbf16>
    %cst_24 = arith.constant dense<0.000000e+00> : vector<8x16xf32>
    %74 = tpu.matmul %71, %72, %cst_24 {dimension_numbers = #tpu.dot_dimension_numbers<[1], [1], [0], [0], [0, 0, 1, 0], [], []>} : vector<8x32xbf16>, vector<16x32xbf16>, vector<8x16xf32> -> vector<8x16xf32>
    %cst_25 = arith.constant 0.176776692 : f32
    %75 = vector.broadcast %cst_25 : f32 to vector<8x16xf32>
    %76 = arith.mulf %74, %75 : vector<8x16xf32>
    %cst_26 = arith.constant dense<0xFF800000> : vector<8xf32>
    %77 = vector.multi_reduction <maximumf>, %76, %cst_26 [1] : vector<8x16xf32> to vector<8xf32>
    %78 = vector.shape_cast %77 : vector<8xf32> to vector<8x1xf32>
    %79 = vector.broadcast %78 : vector<8x1xf32> to vector<8x16xf32>
    %80 = arith.subf %76, %79 : vector<8x16xf32>
    %81 = math.exp %80 : vector<8x16xf32>
    %cst_27 = arith.constant dense<0.000000e+00> : vector<8xf32>
    %82 = vector.multi_reduction <add>, %81, %cst_27 [1] : vector<8x16xf32> to vector<8xf32>
    %83 = vector.shape_cast %82 : vector<8xf32> to vector<8x1xf32>
    %84 = tpu.reciprocal %83 {approx = true} : vector<8x1xf32> -> vector<8x1xf32>
    %85 = vector.broadcast %84 : vector<8x1xf32> to vector<8x16xf32>
    %86 = arith.mulf %81, %85 : vector<8x16xf32>
    %87 = arith.truncf %86 : vector<8x16xf32> to vector<8x16xbf16>
    %cst_28 = arith.constant dense<0.000000e+00> : vector<8x32xf32>
    %88 = tpu.matmul %87, %73, %cst_28 {dimension_numbers = #tpu.dot_dimension_numbers<[1], [0], [0], [1], [0, 0, 1, 1], [], []>} : vector<8x16xbf16>, vector<16x32xbf16>, vector<8x32xf32> -> vector<8x32xf32>
    %89 = tpu.concatenate %34, %52, %70, %88 in 1 : vector<8x32xf32>, vector<8x32xf32>, vector<8x32xf32>, vector<8x32xf32> -> vector<8x128xf32>
    %90 = arith.truncf %89 : vector<8x128xf32> to vector<8x128xbf16>
    %c0_29 = arith.constant 0 : index
    %c0_30 = arith.constant 0 : index
    %91 = vector.load %arg5[%c0_29, %c0_30] : memref<128x128xbf16, #tpu.memory_space<vmem>>, vector<128x128xbf16>
    %cst_31 = arith.constant dense<0.000000e+00> : vector<8x128xf32>
    %92 = tpu.matmul %90, %91, %cst_31 {dimension_numbers = #tpu.dot_dimension_numbers<[1], [0], [0], [1], [0, 0, 1, 1], [], []>} : vector<8x128xbf16>, vector<128x128xbf16>, vector<8x128xf32> -> vector<8x128xf32>
    %c0_32 = arith.constant 0 : index
    %c0_33 = arith.constant 0 : index
    %93 = vector.load %arg6[%c0_32, %c0_33] : memref<6x128xf32, #tpu.memory_space<vmem>>, vector<1x128xf32>
    %94 = vector.broadcast %93 : vector<1x128xf32> to vector<8x128xf32>
    %95 = arith.addf %92, %94 : vector<8x128xf32>
    %96 = arith.addf %7, %95 : vector<8x128xf32>
    %c1 = arith.constant 1 : index
    %c0_34 = arith.constant 0 : index
    %97 = vector.load %arg6[%c1, %c0_34] : memref<6x128xf32, #tpu.memory_space<vmem>>, vector<1x128xf32>
    %c2 = arith.constant 2 : index
    %c0_35 = arith.constant 0 : index
    %98 = vector.load %arg6[%c2, %c0_35] : memref<6x128xf32, #tpu.memory_space<vmem>>, vector<1x128xf32>
    %cst_36 = arith.constant dense<0.000000e+00> : vector<8xf32>
    %99 = vector.multi_reduction <add>, %96, %cst_36 [1] : vector<8x128xf32> to vector<8xf32>
    %100 = vector.shape_cast %99 : vector<8xf32> to vector<8x1xf32>
    %cst_37 = arith.constant 1.280000e+02 : f32
    %101 = vector.broadcast %cst_37 : f32 to vector<8x1xf32>
    %102 = arith.divf %100, %101 : vector<8x1xf32>
    %103 = vector.broadcast %102 : vector<8x1xf32> to vector<8x128xf32>
    %104 = arith.subf %96, %103 : vector<8x128xf32>
    %105 = vector.broadcast %102 : vector<8x1xf32> to vector<8x128xf32>
    %106 = arith.subf %96, %105 : vector<8x128xf32>
    %107 = arith.mulf %104, %106 : vector<8x128xf32>
    %cst_38 = arith.constant dense<0.000000e+00> : vector<8xf32>
    %108 = vector.multi_reduction <add>, %107, %cst_38 [1] : vector<8x128xf32> to vector<8xf32>
    %109 = vector.shape_cast %108 : vector<8xf32> to vector<8x1xf32>
    %cst_39 = arith.constant 1.280000e+02 : f32
    %110 = vector.broadcast %cst_39 : f32 to vector<8x1xf32>
    %111 = arith.divf %109, %110 : vector<8x1xf32>
    %112 = vector.broadcast %102 : vector<8x1xf32> to vector<8x128xf32>
    %113 = arith.subf %96, %112 : vector<8x128xf32>
    %cst_40 = arith.constant 9.99999974E-6 : f32
    %114 = vector.broadcast %cst_40 : f32 to vector<8x1xf32>
    %115 = arith.addf %111, %114 : vector<8x1xf32>
    %116 = math.rsqrt %115 : vector<8x1xf32>
    %117 = vector.broadcast %116 : vector<8x1xf32> to vector<8x128xf32>
    %118 = arith.mulf %113, %117 : vector<8x128xf32>
    %119 = vector.broadcast %97 : vector<1x128xf32> to vector<8x128xf32>
    %120 = arith.mulf %118, %119 : vector<8x128xf32>
    %121 = vector.broadcast %98 : vector<1x128xf32> to vector<8x128xf32>
    %122 = arith.addf %120, %121 : vector<8x128xf32>
    %123 = arith.truncf %122 : vector<8x128xf32> to vector<8x128xbf16>
    %c0_41 = arith.constant 0 : index
    %c0_42 = arith.constant 0 : index
    %124 = vector.load %arg7[%c0_41, %c0_42] : memref<128x256xbf16, #tpu.memory_space<vmem>>, vector<128x256xbf16>
    %cst_43 = arith.constant dense<0.000000e+00> : vector<8x256xf32>
    %125 = tpu.matmul %123, %124, %cst_43 {dimension_numbers = #tpu.dot_dimension_numbers<[1], [0], [0], [1], [0, 0, 1, 1], [], []>} : vector<8x128xbf16>, vector<128x256xbf16>, vector<8x256xf32> -> vector<8x256xf32>
    %c0_44 = arith.constant 0 : index
    %c0_45 = arith.constant 0 : index
    %126 = vector.load %arg8[%c0_44, %c0_45] : memref<1x256xf32, #tpu.memory_space<vmem>>, vector<1x256xf32>
    %127 = vector.broadcast %126 : vector<1x256xf32> to vector<8x256xf32>
    %128 = arith.addf %125, %127 : vector<8x256xf32>
    %cst_46 = arith.constant 0.000000e+00 : f32
    %129 = vector.broadcast %cst_46 : f32 to vector<8x256xf32>
    %130 = arith.maximumf %128, %129 : vector<8x256xf32>
    %131 = arith.truncf %130 : vector<8x256xf32> to vector<8x256xbf16>
    %c0_47 = arith.constant 0 : index
    %c0_48 = arith.constant 0 : index
    %132 = vector.load %arg9[%c0_47, %c0_48] : memref<256x128xbf16, #tpu.memory_space<vmem>>, vector<256x128xbf16>
    %cst_49 = arith.constant dense<0.000000e+00> : vector<8x128xf32>
    %133 = tpu.matmul %131, %132, %cst_49 {dimension_numbers = #tpu.dot_dimension_numbers<[1], [0], [0], [1], [0, 0, 1, 1], [], []>} : vector<8x256xbf16>, vector<256x128xbf16>, vector<8x128xf32> -> vector<8x128xf32>
    %c3 = arith.constant 3 : index
    %c0_50 = arith.constant 0 : index
    %134 = vector.load %arg6[%c3, %c0_50] : memref<6x128xf32, #tpu.memory_space<vmem>>, vector<1x128xf32>
    %135 = vector.broadcast %134 : vector<1x128xf32> to vector<8x128xf32>
    %136 = arith.addf %133, %135 : vector<8x128xf32>
    %137 = arith.addf %122, %136 : vector<8x128xf32>
    %c4 = arith.constant 4 : index
    %c0_51 = arith.constant 0 : index
    %138 = vector.load %arg6[%c4, %c0_51] : memref<6x128xf32, #tpu.memory_space<vmem>>, vector<1x128xf32>
    %c5 = arith.constant 5 : index
    %c0_52 = arith.constant 0 : index
    %139 = vector.load %arg6[%c5, %c0_52] : memref<6x128xf32, #tpu.memory_space<vmem>>, vector<1x128xf32>
    %cst_53 = arith.constant dense<0.000000e+00> : vector<8xf32>
    %140 = vector.multi_reduction <add>, %137, %cst_53 [1] : vector<8x128xf32> to vector<8xf32>
    %141 = vector.shape_cast %140 : vector<8xf32> to vector<8x1xf32>
    %cst_54 = arith.constant 1.280000e+02 : f32
    %142 = vector.broadcast %cst_54 : f32 to vector<8x1xf32>
    %143 = arith.divf %141, %142 : vector<8x1xf32>
    %144 = vector.broadcast %143 : vector<8x1xf32> to vector<8x128xf32>
    %145 = arith.subf %137, %144 : vector<8x128xf32>
    %146 = vector.broadcast %143 : vector<8x1xf32> to vector<8x128xf32>
    %147 = arith.subf %137, %146 : vector<8x128xf32>
    %148 = arith.mulf %145, %147 : vector<8x128xf32>
    %cst_55 = arith.constant dense<0.000000e+00> : vector<8xf32>
    %149 = vector.multi_reduction <add>, %148, %cst_55 [1] : vector<8x128xf32> to vector<8xf32>
    %150 = vector.shape_cast %149 : vector<8xf32> to vector<8x1xf32>
    %cst_56 = arith.constant 1.280000e+02 : f32
    %151 = vector.broadcast %cst_56 : f32 to vector<8x1xf32>
    %152 = arith.divf %150, %151 : vector<8x1xf32>
    %153 = vector.broadcast %143 : vector<8x1xf32> to vector<8x128xf32>
    %154 = arith.subf %137, %153 : vector<8x128xf32>
    %cst_57 = arith.constant 9.99999974E-6 : f32
    %155 = vector.broadcast %cst_57 : f32 to vector<8x1xf32>
    %156 = arith.addf %152, %155 : vector<8x1xf32>
    %157 = math.rsqrt %156 : vector<8x1xf32>
    %158 = vector.broadcast %157 : vector<8x1xf32> to vector<8x128xf32>
    %159 = arith.mulf %154, %158 : vector<8x128xf32>
    %160 = vector.broadcast %138 : vector<1x128xf32> to vector<8x128xf32>
    %161 = arith.mulf %159, %160 : vector<8x128xf32>
    %162 = vector.broadcast %139 : vector<1x128xf32> to vector<8x128xf32>
    %163 = arith.addf %161, %162 : vector<8x128xf32>
    %c0_58 = arith.constant 0 : index
    %c0_59 = arith.constant 0 : index
    %c0_60 = arith.constant 0 : index
    %164 = vector.load %arg10[%c0_58, %c0_59, %c0_60] : memref<1x8x128xf32, #tpu.memory_space<vmem>>, vector<1x8x128xf32>
    %165 = vector.shape_cast %164 : vector<1x8x128xf32> to vector<8x128xf32>
    %166 = vector.shape_cast %163 : vector<8x128xf32> to vector<1x8x128xf32>
    tpu.vector_store %arg10[%c0_58, %c0_59, %c0_60], %166 {strides = array<i32>} : memref<1x8x128xf32, #tpu.memory_space<vmem>>, vector<1x8x128xf32>,
    return
  }
  func.func @transform_0(%arg0: i32, %arg1: i32) -> (i32, i32, i32) {
    %c0_i32 = arith.constant 0 : i32
    %c0_i32_0 = arith.constant 0 : i32
    %c0_i32_1 = arith.constant 0 : i32
    return %arg0, %c0_i32, %c0_i32_0 : i32, i32, i32
  }
  func.func @transform_1(%arg0: i32, %arg1: i32) -> (i32, i32) {
    %c0_i32 = arith.constant 0 : i32
    %c0_i32_0 = arith.constant 0 : i32
    %c0_i32_1 = arith.constant 0 : i32
    return %c0_i32, %c0_i32_0 : i32, i32
  }
  func.func @transform_2(%arg0: i32, %arg1: i32) -> (i32, i32) {
    %c0_i32 = arith.constant 0 : i32
    %c0_i32_0 = arith.constant 0 : i32
    %c0_i32_1 = arith.constant 0 : i32
    return %c0_i32, %c0_i32_0 : i32, i32
  }
  func.func @transform_3(%arg0: i32, %arg1: i32) -> (i32, i32) {
    %c0_i32 = arith.constant 0 : i32
    %c0_i32_0 = arith.constant 0 : i32
    %c0_i32_1 = arith.constant 0 : i32
    return %c0_i32, %c0_i32_0 : i32, i32
  }
  func.func @transform_4(%arg0: i32, %arg1: i32) -> (i32, i32) {
    %c0_i32 = arith.constant 0 : i32
    %c0_i32_0 = arith.constant 0 : i32
    %c0_i32_1 = arith.constant 0 : i32
    return %c0_i32, %c0_i32_0 : i32, i32
  }
  func.func @transform_5(%arg0: i32, %arg1: i32) -> (i32, i32) {
    %c0_i32 = arith.constant 0 : i32
    %c0_i32_0 = arith.constant 0 : i32
    %c0_i32_1 = arith.constant 0 : i32
    return %c0_i32, %c0_i32_0 : i32, i32
  }
  func.func @transform_6(%arg0: i32, %arg1: i32) -> (i32, i32) {
    %c0_i32 = arith.constant 0 : i32
    %c0_i32_0 = arith.constant 0 : i32
    %c0_i32_1 = arith.constant 0 : i32
    return %c0_i32, %c0_i32_0 : i32, i32
  }
  func.func @transform_7(%arg0: i32, %arg1: i32) -> (i32, i32) {
    %c0_i32 = arith.constant 0 : i32
    %c0_i32_0 = arith.constant 0 : i32
    %c0_i32_1 = arith.constant 0 : i32
    return %c0_i32, %c0_i32_0 : i32, i32
  }
  func.func @transform_8(%arg0: i32, %arg1: i32) -> (i32, i32, i32) {
    %c0_i32 = arith.constant 0 : i32
    %c0_i32_0 = arith.constant 0 : i32
    return %arg0, %arg1, %c0_i32 : i32, i32, i32
  }
}

</mosaic_0001>

<bundles_post_ra>
// kernel: tpu_custom_call.1
= control target key start
LH: loop header
LB: loop body
LE: loop exit
PB: predicated region body
PF: predicated region fallthrough
CT: control target
= control target key end

     0   :  { %s3209_s0 = inlined_call_operand.hbm [shape: f32[2,16,128], index: 0, kind: input, shape index: {}]   ;;  %s3210_s1 = inlined_call_operand.hbm [shape: bf16[128,384], index: 1, kind: input, shape index: {}]   ;;  %s3211_s2 = inlined_call_operand.vmem [shape: f32[1,384], index: 2, kind: input, shape index: {}]   ;;  %s3212_s3 = inlined_call_operand.hbm [shape: bf16[128,128], index: 3, kind: input, shape index: {}]   ;;  %s3213_s4 = inlined_call_operand.vmem [shape: f32[6,128], index: 4, kind: input, shape index: {}]   ;;  %s3214_s5 = inlined_call_operand.hbm [shape: bf16[128,256], index: 5, kind: input, shape index: {}]   ;;  %s3215_s6 = inlined_call_operand.vmem [shape: f32[1,256], index: 6, kind: input, shape index: {}]   ;;  %s3216_s7 = inlined_call_operand.hbm [shape: bf16[256,128], index: 7, kind: input, shape index: {}]   ;;  %s3217_s8 = inlined_call_operand.hbm [shape: f32[2,16,128], index: 8, kind: output, shape index: {}]  }
   0x1   :  { %3232 = sst [smem:[#allocation21_spill]] %s3210_s1 }
   0x2   :  { %3233 = sst [smem:[#allocation22_spill]] %s3211_s2 }
   0x3   :  { %3234 = sst [smem:[#allocation23_spill]] %s3212_s3 }
   0x4   :  { %3235 = sst [smem:[#allocation24_spill]] %s3213_s4 }
   0x5   :  { %3236 = sst [smem:[#allocation25_spill]] %s3214_s5 }
   0x6   :  { %3237 = sst [smem:[#allocation26_spill]] %s3215_s6 }
   0x7   :  { %3238 = sst [smem:[#allocation27_spill]] %s3217_s8 }
   0x8   :  { %13 = vsyncpa [#allocation4], 0 }
   0x9   :  { %15 = vsyncpa [#allocation4 + $0x1], 0 }
   0xa   :  { %16 = vsyncpa [#allocation7], 0 }
   0xb   :  { %17 = vsyncpa [#allocation10], 0 }
   0xc   :  { %18 = vsyncpa [#allocation5], 0 }
   0xd   :  { %20 = vsyncpa [#allocation5 + $0x1], 0  ;;  %s2724_s27 = smov 0   ;;  %s2726_s28 = smov 0  }
   0xe   :  { %s2728_s29 = smov 0   ;;  %s2730_s30 = smov 0  }
   0xf   :  { %s2732_s9 = smov 0   ;;  %s2734_s10 = smov 0  }
  0x10   :  { %s2736_s11 = smov 0   ;;  %s2738_s12 = smov 0  }
  0x11   :  { %s2740_s13 = smov 0   ;;  %s2742_s14 = smov 0  }
  0x12   :  { %s2744_s15 = smov 0  }
  0x13 LB: > { %3239 = sst [smem:[#allocation17_spill]] %s2617_s27  ;;  %s1827_s16 = sadd.s32 4294967295, %s2657_s15   ;;  %s2657_s15 = sphi %s2744_s15, %s26_s15   ;;  %s2653_s14 = sphi %s2742_s14, %s3280_s14   ;;  %s2649_s13 = sphi %s2740_s13, %s3279_s13   ;;  %s2645_s12 = sphi %s2738_s12, %s3278_s12   ;;  %s2641_s11 = sphi %s2736_s11, %s3277_s11   ;;  %s2637_s10 = sphi %s2734_s10, %s3276_s10   ;;  %s2633_s9 = sphi %s2732_s9, %s3275_s9   ;;  %s2629_s30 = sphi %s2730_s30, %s3274_s30   ;;  %s2625_s29 = sphi %s2728_s29, %s3273_s29   ;;  %s2621_s28 = sphi %s2726_s28, %s3272_s28   ;;  %s2617_s27 = sphi %s2724_s27, %s3271_s27  }
  0x14   : > { %3240 = sst [smem:[#allocation18_spill]] %s2645_s12  ;;  %s1828_s17 = sadd.s32 4294967294, %s2657_s15  }
  0x15   : > { %p58_p0 = scmp.ne.s32.totalorder %s2633_s9, %s2629_s30  ;;  %p2780_p1 = scmp.eq.s32.totalorder %s1827_s16, 0 }
  0x16   : > { %p230_p2 = scmp.ne.s32.totalorder %s2625_s29, %s2621_s28  ;;  %p231_p3 = scmp.eq.s32.totalorder %s1827_s16, 3 }
  0x17   : > { %s3241_s18 = scalar_select %p2780_p1, 1, 0 }
  0x18   : > { %p2788_p4 = por %p2780_p1, %p58_p0  ;;  %p236_p5 = scmp.ne.s32.totalorder %s2621_s28, %s2617_s27 }
  0x19   : > { %p2794_p6 = por %p231_p3, %p230_p2  ;;  %p237_p7 = scmp.eq.s32.totalorder %s1828_s17, 3 }
  0x1a   : > { %s3242_s19 = scalar_select %p2788_p4, 1, 0 }
  0x1b   : > { %s3243_s20 = scalar_select %p2794_p6, 1, 0 }
  0x1c   : > { %p1829_p8 = scmp.ge.s32.totalorder %s2657_s15, 1  ;;  %p244_p9 = scmp.lt.s32.totalorder %s2657_s15, 5 }
  0x1d   : > { %3244 = sst [smem:[#allocation19_spill]] %s3243_s20  ;;  %p2800_p10 = por %p237_p7, %p236_p5 }
  0x1e   : > { %p2804_p11 = pnand %p1829_p8, %p244_p9  ;;  %s2659_s23 = smov [#allocation6]  }
  0x1f   : > { %s3245_s21 = scalar_select %p2800_p10, 1, 0 }
  0x20   : > { %s3247_s22 = scalar_select %p2804_p11, 1, 0 }
  0x21   : > { %3246 = sst [smem:[#allocation20_spill]] %s3245_s21  ;;  %s256_s24 = sshll.u32 %s2659_s23, 4  ;;  %s257_s24 = int_to_ptr.vmem [resolvable:$true] %s256_s24 }
  0x22   : > { %p2156_p12 = pneg %p2804_p11  ;;  %s2660_s26 = smov [#allocation9]  }
  0x23   : > { %s288_s30 = sshll.u32 %s2660_s26, 4  ;;  %s3249_s1 = sld [smem:[#allocation21_spill]]  ;;  %s2816_s30 = int_to_ptr.vmem [resolvable:$true] %s288_s30 }
  0x24   : > { %p2812_p13 = pnand %p2156_p12, %p2780_p1 }
  0x26   : > { %p2826_p2 = pneg %p2812_p13 }
  0x29   : > { %s2385_s21 = scalar_lea.hbm %s3249_s1, 3072 }
  0x2a   : > { %p2386_p0 = scmp.ne.s32.totalorder %s3249_s1, %s2385_s21  ;;  %p2392_p7 = scmp.lt.u32.totalorder %s2385_s21, %s3249_s1 }
  0x2c   : > { %p2388_p3 = pnand %p2826_p2, %p2386_p0 }
  0x2e   : > { %p2389_p5 = pneg %p2388_p3 }
  0x30   : > { %p2394_p8 = pnand %p2392_p7, %p2389_p5 }
  0x32   : > { %2397 = shalt.err (!%p2394_p8)
}
  0x33   : > { %s2398_s16 = scalar_lea.vmem %s257_s24, 3072  ;;  %p2406_p6 = scmp.lt.s32.totalorder %s257_s24, %s257_s24 }
  0x34   : > { %p2399_p9 = scmp.ne.s32.totalorder %s257_s24, %s2398_s16  ;;  %p2407_p1 = scmp.lt.s32.totalorder %s2398_s16, %s2398_s16 }
  0x36   : > { %p2401_p12 = pnand %p2399_p9, %p2826_p2  ;;  %p2408_p4 = por %p2407_p1, %p2406_p6 }
  0x38   : > { %p2402_p10 = pneg %p2401_p12 }
  0x3a   : > { %p2409_p11 = pnand %p2408_p4, %p2402_p10 }
  0x3c   : > { %2412 = shalt.err (!%p2409_p11)
}
  0x3d   : > { %s2661_s8 = smov 192   ;;  %s2662_s27 = smov 12  }
  0x3e   : > { %2159 = dma.hbm_to_vmem [thread:$0]  (!%p2812_p13), %s3249_s1, 3072, %s257_s24, [#allocation7], %s2661_s8, %s2661_s8, %s2662_s27  }
  0x3f   : > { %s3251_s5 = sld [smem:[#allocation25_spill]] }
  0x45   : > { %s2413_s12 = scalar_lea.hbm %s3251_s5, 2048 }
  0x46   : > { %p2414_p0 = scmp.ne.s32.totalorder %s3251_s5, %s2413_s12  ;;  %p2420_p6 = scmp.lt.u32.totalorder %s2413_s12, %s3251_s5 }
  0x48   : > { %p2416_p1 = pnand %p2414_p0, %p2826_p2 }
  0x4a   : > { %p2417_p4 = pneg %p2416_p1 }
  0x4c   : > { %p2422_p10 = pnand %p2420_p6, %p2417_p4 }
  0x4e   : > { %2425 = shalt.err (!%p2422_p10)
}
  0x4f   : > { %s2426_s24 = scalar_lea.vmem %s2816_s30, 2048  ;;  %p2434_p7 = scmp.lt.s32.totalorder %s2816_s30, %s2816_s30 }
  0x50   : > { %p2427_p11 = scmp.ne.s32.totalorder %s2816_s30, %s2426_s24  ;;  %p2435_p8 = scmp.lt.s32.totalorder %s2426_s24, %s2426_s24 }
  0x52   : > { %p2429_p3 = pnand %p2427_p11, %p2826_p2  ;;  %p2436_p9 = por %p2435_p8, %p2434_p7 }
  0x54   : > { %p2430_p5 = pneg %p2429_p3 }
  0x56   : > { %p2437_p12 = pnand %p2436_p9, %p2430_p5 }
  0x58   : > { %2440 = shalt.err (!%p2437_p12)
}
  0x59   : > { %s3230_s4 = smov 128   ;;  %s3231_s2 = smov 8  }
  0x5a   : > { %2165 = dma.hbm_to_vmem [thread:$0]  (!%p2812_p13), %s3251_s5, 2048, %s2816_s30, [#allocation10], %s3230_s4, %s3230_s4, %s3231_s2  }
  0x5b   : > { %s2665_s8 = smov [#allocation8]   ;;  %s3252_s3 = sld [smem:[#allocation23_spill]] }
  0x5c   : > { %s272_s27 = sshll.u32 %s2665_s8, 4  ;;  %s273_s27 = int_to_ptr.vmem [resolvable:$true] %s272_s27 }
  0x61   : > { %s2441_s17 = scalar_lea.hbm %s3252_s3, 1024 }
  0x62   : > { %p2442_p0 = scmp.ne.s32.totalorder %s3252_s3, %s2441_s17  ;;  %p2448_p6 = scmp.lt.u32.totalorder %s2441_s17, %s3252_s3 }
  0x64   : > { %p2444_p1 = pnand %p2442_p0, %p2826_p2 }
  0x66   : > { %p2445_p4 = pneg %p2444_p1 }
  0x68   : > { %p2450_p10 = pnand %p2448_p6, %p2445_p4 }
  0x6a   : > { %2453 = shalt.err (!%p2450_p10)
}
  0x6b   : > { %s2454_s30 = scalar_lea.vmem %s273_s27, 1024  ;;  %p2462_p7 = scmp.lt.s32.totalorder %s273_s27, %s273_s27 }
  0x6c   : > { %p2455_p11 = scmp.ne.s32.totalorder %s273_s27, %s2454_s30  ;;  %p2463_p8 = scmp.lt.s32.totalorder %s2454_s30, %s2454_s30 }
  0x6e   : > { %p2457_p3 = pnand %p2455_p11, %p2826_p2  ;;  %p2464_p9 = por %p2463_p8, %p2462_p7 }
  0x70   : > { %p2458_p5 = pneg %p2457_p3 }
  0x72   : > { %p2465_p12 = pnand %p2464_p9, %p2458_p5 }
  0x74   : > { %2468 = shalt.err (!%p2465_p12)
}
  0x75   : > { %s2666_s6 = smov 64   ;;  %s2667_s12 = smov 4  }
  0x76   : > { %2162 = dma.hbm_to_vmem [thread:$0]  (!%p2812_p13), %s3252_s3, 1024, %s273_s27, [#allocation7], %s2666_s6, %s2666_s6, %s2667_s12  }
  0x77   : > { %s2668_s20 = smov [#allocation11]   ;;  %s2469_s16 = scalar_lea.hbm %s3216_s7, 2048 }
  0x78   : > { %s304_s21 = sshll.u32 %s2668_s20, 4  ;;  %p2470_p0 = scmp.ne.s32.totalorder %s3216_s7, %s2469_s16  ;;  %s305_s21 = int_to_ptr.vmem [resolvable:$true] %s304_s21 }
  0x79   : > { %p2476_p6 = scmp.lt.u32.totalorder %s2469_s16, %s3216_s7 }
  0x7a   : > { %p2472_p1 = pnand %p2470_p0, %p2826_p2 }
  0x7c   : > { %p2473_p4 = pneg %p2472_p1 }
  0x7e   : > { %p2478_p10 = pnand %p2476_p6, %p2473_p4 }
  0x80   : > { %2481 = shalt.err (!%p2478_p10)
}
  0x81   : > { %s2482_s27 = scalar_lea.vmem %s305_s21, 2048  ;;  %p2490_p7 = scmp.lt.s32.totalorder %s305_s21, %s305_s21 }
  0x82   : > { %p2483_p11 = scmp.ne.s32.totalorder %s305_s21, %s2482_s27  ;;  %p2491_p8 = scmp.lt.s32.totalorder %s2482_s27, %s2482_s27 }
  0x84   : > { %p2485_p3 = pnand %p2483_p11, %p2826_p2  ;;  %p2492_p9 = por %p2491_p8, %p2490_p7 }
  0x86   : > { %p2486_p5 = pneg %p2485_p3 }
  0x88   : > { %p2493_p12 = pnand %p2492_p9, %p2486_p5 }
  0x8a   : > { %2496 = shalt.err (!%p2493_p12)
}
  0x8b   : > { %2168 = dma.hbm_to_vmem [thread:$0]  (!%p2812_p13), %s3216_s7, 2048, %s305_s21, [#allocation10], %s2666_s6, %s2666_s6, %s2667_s12  }
  0x8c   : > { %s35_s23 = sadd.s32 1, %s2649_s13  ;;  %s38_s25 = sadd.s32 1, %s2653_s14 }
  0x8d   : > { %p36_p2 = scmp.ge.s32.totalorder %s35_s23, 2  ;;  %s45_s4 = sadd.s32 1, %s2637_s10 }
  0x8e   : > { %p52_p0 = scmp.ne.s32.totalorder %s2637_s10, %s2633_s9  ;;  %p53_p1 = scmp.eq.s32.totalorder %s2657_s15, 0 }
  0x8f   : > { %s3282_s23 = smov (%p36_p2, %s35_s23), 0  ;;  %s3284_s25 = smov (!%p36_p2, %s38_s25), %s2653_s14 }
  0x90   : > { %s216_s2 = ssub.s32 %s2649_s13, %s3282_s23  ;;  %p40_p4 = scmp.ge.s32.totalorder %s3284_s25, 2 }
  0x91   : > { %s220_s20 = sadd.s32 1, %s2625_s29  ;;  %p2916_p6 = por %p53_p1, %p52_p0 }
  0x92   : > { %p2181_p13 = scmp.lt.s32.totalorder %s2657_s15, 4  ;;  %s3286_s25 = smov (%p40_p4, %s3284_s25), 0 }
  0x93   : > { %s318_s12 = sand.u32 1, %s2637_s10   ;;  %s1933_s21 = sshll.u32 %s2653_s14, 8 }
  0x94   : > { %s42_s17 = ssub.s32 %s2653_s14, %s3286_s25  ;;  %s1835_s16 = sshll.u32 %s318_s12, 4 }
  0x95   : > { %p43_p10 = scmp.eq.s32.totalorder %s42_s17, 0  ;;  %s217_s26 = sor.u32 %s216_s2, %s42_s17 }
  0x96   : > { %p218_p11 = scmp.eq.s32.totalorder %s217_s26, 0  ;;  %s2936_s8 = scalar_lea.hbm %s3209_s0, %s1933_s21 }
  0x97   : > { %s2928_s24 = scalar_select %p43_p10, %s2637_s10, %s45_s4  }
  0x98   : > { %s2931_s30 = scalar_select %p218_p11, %s2625_s29, %s220_s20  }
  0x99   : > { %s322_s3 = scalar_lea.vmem [#allocation3], %s1835_s16  ;;  %p2942_p3 = pnand %p2181_p13, %p2916_p6 }
  0x9a   : > { %s329_s5 = sshll.u32 %s322_s3, 4  ;;  %s2948_s4 = scalar_lea.sflag [#allocation4], %s318_s12  ;;  %s2946_s5 = int_to_ptr.vmem [resolvable:$true] %s329_s5 }
  0x9b   : > { %s2497_s20 = scalar_lea.hbm %s2936_s8, 256  ;;  %p2499_p7 = pneg %p2942_p3 }
  0x9c   : > { %p2498_p5 = scmp.ne.s32.totalorder %s2936_s8, %s2497_s20  ;;  %s2502_s21 = scalar_lea.hbm %s3209_s0, 512 }
  0x9d   : > { %p2503_p12 = scmp.lt.u32.totalorder %s2936_s8, %s3209_s0  ;;  %p2504_p2 = scmp.lt.u32.totalorder %s2502_s21, %s2497_s20 }
  0x9e   : > { %p2500_p8 = pnand %p2499_p7, %p2498_p5  ;;  %p2506_p1 = scmp.lt.u32.totalorder %s2497_s20, %s2936_s8 }
  0x9f   : > { %p2505_p0 = por %p2504_p2, %p2503_p12 }
  0xa0   : > { %p2501_p9 = pneg %p2500_p8 }
  0xa1   : > { %p2507_p4 = por %p2506_p1, %p2505_p0 }
  0xa3   : > { %p2508_p6 = pnand %p2507_p4, %p2501_p9 }
  0xa5   : > { %2511 = shalt.err (!%p2508_p6)
}
  0xa6   : > { %s2512_s12 = scalar_lea.vmem %s2946_s5, 256  ;;  %s2669_s16 = smov [#allocation3]  }
  0xa7   : > { %p2513_p13 = scmp.ne.s32.totalorder %s2946_s5, %s2512_s12  ;;  %s2517_s27 = sshll.u32 %s2669_s16, 4  ;;  %s2518_s27 = int_to_ptr.vmem [resolvable:$false] %s2517_s27 }
  0xa8   : > { %s2519_s1 = scalar_lea.vmem %s2518_s27, 512  ;;  %p2520_p5 = scmp.lt.s32.totalorder %s2946_s5, %s2518_s27 }
  0xa9   : > { %p2515_p10 = pnand %p2513_p13, %p2499_p7  ;;  %p2521_p8 = scmp.lt.s32.totalorder %s2519_s1, %s2512_s12 }
  0xab   : > { %p2516_p11 = pneg %p2515_p10  ;;  %p2522_p12 = por %p2521_p8, %p2520_p5 }
  0xad   : > { %p2523_p2 = pnand %p2522_p12, %p2516_p11 }
  0xaf   : > { %2526 = shalt.err (!%p2523_p2)
}
  0xb0   : > { %s3255_s20 = smov 8   ;;  %s3256_s3 = smov 128  }
  0xb1   : > { %2172 = dma.hbm_to_vmem [thread:$0]  (!%p2942_p3), %s2936_s8, 256, %s2946_s5, %s2948_s4, %s3256_s3, %s3256_s3, %s3255_s20  }
  0xb2   : > { %p3257_p7 = scmp.ne.s32.totalorder %s3247_s22, 0 }
  0xb3   : > { %s343_s6 = sand.u32 (!%p3257_p7), 1, %s2633_s9   ;;  %p3258_p9 = scmp.ne.s32.totalorder (!%p3257_p7), %s3242_s19, 0 }
  0xb4   : > { %341 = sbr.rel (%p3257_p7) target bundleno = 4464 (0x1170), region = 52  ;;  %s1839_s21 = sshll.u32 (!%p3257_p7), %s343_s6, 4 }
  0xb5   : > { %s344_s17 = scalar_lea.sflag (!%p3257_p7), [#allocation4], %s343_s6  ;;  %s2982_s26 = scalar_lea.vmem (!%p3257_p7), [#allocation3], %s1839_s21 }
  0xbb   : > { %2600 = dma.done.wait (%p3258_p9), %s344_s17, 256  }
  0xbc   : > { %2602 = vsyncadd (%p3258_p9), %s344_s17, 4294967040  ;;  %p3259_p0 = scmp.ne.s32.totalorder %s3241_s18, 0 }
  0xbe   : > { %2604 = dma.done.wait (%p3259_p0), [#allocation7], 4096  }
  0xbf   : > { %2606 = vsyncadd (%p3259_p0), [#allocation7], 4294963200 }
  0xc0   : > { %2608 = dma.done.wait (%p3259_p0), [#allocation10], 4096  }
  0xc1   : > { %2610 = vsyncadd (%p3259_p0), [#allocation10], 4294963200  ;;  %s393_s5 = sand.u32 1, %s2621_s28   ;;  %p1845_p3 = scmp.ne.s32.totalorder %s2641_s11, 0 }
  0xc2   : > { %s2999_s22 = sshll.u32 %s393_s5, 3  ;;  %v2670_v0 = vmov (!%p1845_p3), 0.0   ;;  %v2293_v1 = vld [vmem:[#allocation6 + $0x4] ss:$12 sps:$4 sm:$0xff] (!%p1845_p3)   ;;  %v2294_v2 = vld [vmem:[#allocation6 + $0x8] ss:$12 sps:$4 sm:$0xff] (!%p1845_p3)  }
  0xc3   : > { %s395_s19 = scalar_lea.vmem [#allocation12], %s2999_s22  ;;  %400 = sbr.rel (%p1845_p3) target bundleno = 447 (0x1bf), region = 76  ;;  %2008 = vmatprep.subr.bf16.mxu0 (!%p1845_p3), %v2670_v0  ;;  %2028 = vmatprep.subr.bf16.mxu1 (!%p1845_p3), %v2670_v0  ;;  %vm2671_vm0 = vmmov (!%p1845_p3), 0   ;;  %v2295_v3 = vld [vmem:[#allocation6 + $0x1c] ss:$12 sps:$4 sm:$0xff] (!%p1845_p3)   ;;  %v401_v16 = vld [vmem:[%s2982_s26] sm:$0xff] (!%p1845_p3) }
  0xc4   : > { %2024 = vmatprep.mubr.msk.bf16.mxu0 (!%p1845_p3), %vm2671_vm0, %v2670_v0  ;;  %2044 = vmatprep.mubr.msk.bf16.mxu1 (!%p1845_p3), %vm2671_vm0, %v2670_v0  ;;  %v2296_v4 = vld [vmem:[#allocation6 + $0x20] ss:$12 sps:$4 sm:$0xff] (!%p1845_p3)   ;;  %v2298_v6 = vld [vmem:[#allocation6 + $0x38] ss:$12 sps:$4 sm:$0xff] (!%p1845_p3)   ;;  %v2300_v8 = vld [vmem:[#allocation6 + $0x50] ss:$12 sps:$4 sm:$0xff] (!%p1845_p3)  }
  0xc5   : > { %2009 = vmatpush3.bf16.msra.mxu0 (!%p1845_p3), %v2293_v1  ;;  %2029 = vmatpush3.bf16.msra.mxu1 (!%p1845_p3), %v2294_v2  ;;  %v2297_v5 = vld [vmem:[#allocation6 + $0x34] ss:$12 sps:$4 sm:$0xff] (!%p1845_p3)   ;;  %v2299_v7 = vld [vmem:[#allocation6 + $0x4c] ss:$12 sps:$4 sm:$0xff] (!%p1845_p3)   ;;  %v2301_v9 = vld [vmem:[#allocation6 + $0x64] ss:$12 sps:$4 sm:$0xff] (!%p1845_p3)  }
  0xc6   : > { %2010 = vmatprep.subr.bf16.mxu0 (!%p1845_p3), %v2670_v0  ;;  %2030 = vmatprep.subr.bf16.mxu1 (!%p1845_p3), %v2670_v0  ;;  %v2302_v10 = vld [vmem:[#allocation6 + $0x68] ss:$12 sps:$4 sm:$0xff] (!%p1845_p3)   ;;  %v2304_v12 = vld [vmem:[#allocation6 + $0x80] ss:$12 sps:$4 sm:$0xff] (!%p1845_p3)   ;;  %v2306_v14 = vld [vmem:[#allocation6 + $0x98] ss:$12 sps:$4 sm:$0xff] (!%p1845_p3)  }
  0xc7   : > { %v2303_v11 = vld [vmem:[#allocation6 + $0x7c] ss:$12 sps:$4 sm:$0xff] (!%p1845_p3)   ;;  %v2305_v13 = vld [vmem:[#allocation6 + $0x94] ss:$12 sps:$4 sm:$0xff] (!%p1845_p3)   ;;  %v2307_v15 = vld [vmem:[#allocation6 + $0xac] ss:$12 sps:$4 sm:$0xff] (!%p1845_p3)  }
  0xc8   : > { %v402_v17 = vld [vmem:[%s2982_s26 + $0x8] sm:$0xff] (!%p1845_p3)  ;;  %s3260_s2 = sld [smem:[#allocation22_spill]] (!%p1845_p3) }
  0xc9   : > { %2011 = vmatpush3.bf16.msra.mxu0 (!%p1845_p3), %v2295_v3  ;;  %2031 = vmatpush3.bf16.msra.mxu1 (!%p1845_p3), %v2296_v4  ;;  %v2308_v18 = vld [vmem:[#allocation6 + $0xb0] ss:$12 sps:$4 sm:$0xff] (!%p1845_p3)   ;;  %v403_v19 = vpack.c.bf16 (!%p1845_p3), %v402_v17, %v401_v16 }
  0xca   : > { %2012 = vmatprep.subr.bf16.mxu0 %v2670_v0  ;;  %2032 = vmatprep.subr.bf16.mxu1 %v2670_v0 }
  0xcd   : > { %2013 = vmatpush3.bf16.msra.mxu0 %v2297_v5  ;;  %2033 = vmatpush3.bf16.msra.mxu1 %v2298_v6 }
  0xce   : > { %2014 = vmatprep.subr.bf16.mxu0 %v2670_v0  ;;  %2034 = vmatprep.subr.bf16.mxu1 %v2670_v0  ;;  %v1846_v20 = vld [vmem:[%s3260_s2 + $0x1] ss:$0 sm:$0xff]  ;;  %v1855_v22 = vld [vmem:[%s3260_s2 + $0x2] ss:$0 sm:$0xff] }
  0xd1   : > { %2015 = vmatpush3.bf16.msra.mxu0 %v2299_v7  ;;  %2035 = vmatpush3.bf16.msra.mxu1 %v2300_v8 }
  0xd2   : > { %2016 = vmatprep.subr.bf16.mxu0 %v2670_v0  ;;  %2036 = vmatprep.subr.bf16.mxu1 %v2670_v0 }
  0xd5   : > { %2017 = vmatpush3.bf16.msra.mxu0 %v2301_v9  ;;  %2037 = vmatpush3.bf16.msra.mxu1 %v2302_v10 }
  0xd6   : > { %2018 = vmatprep.subr.bf16.mxu0 %v2670_v0  ;;  %2038 = vmatprep.subr.bf16.mxu1 %v2670_v0 }
  0xd9   : > { %2019 = vmatpush3.bf16.msra.mxu0 %v2303_v11  ;;  %2039 = vmatpush3.bf16.msra.mxu1 %v2304_v12 }
  0xda   : > { %2020 = vmatprep.subr.bf16.mxu0 %v2670_v0  ;;  %2040 = vmatprep.subr.bf16.mxu1 %v2670_v0 }
  0xdd   : > { %2021 = vmatpush3.bf16.msra.mxu0 %v2305_v13  ;;  %2041 = vmatpush3.bf16.msra.mxu1 %v2306_v14 }
  0xde   : > { %2022 = vmatprep.subr.bf16.mxu0 %v2670_v0  ;;  %2042 = vmatprep.subr.bf16.mxu1 %v2670_v0 }
  0xe1   : > { %2023 = vmatpush3.bf16.msra.mxu0 %v2307_v15  ;;  %2043 = vmatpush3.bf16.msra.mxu1 %v2308_v18 }
  0xe4   : > { %2025 = vmatmul.mubr.bf16.vlgmr.msra.gmra.mrb[0].mxu0 %v403_v19  ;;  %2045 = vmatmul.mubr.bf16.vlgmr.msra.gmra.mrb[0].mxu1 %v403_v19 }
 0x1b7   : > { %v509_v21 = vpop.f32.mrb[0].mxu0  ;;  %v623_v23 = vpop.f32.mrb[0].mxu1 }
 0x1b8   : > { %v2026_v24 = vpop.f32.mrb[1].mxu0  ;;  %v2046_v25 = vpop.f32.mrb[1].mxu1  ;;  %v510_v27 = vadd.f32 %v1846_v20, %v509_v21  ;;  %v624_v31 = vadd.f32 %v1855_v22, %v623_v23 }
 0x1b9   : > { %v512_v26 = vpop.f32.mrb[2].mxu0  ;;  %v626_v29 = vpop.f32.mrb[2].mxu1 }
 0x1ba   : > { %v513_v28 = vadd.f32 %v1846_v20, %v512_v26  ;;  %v2027_v30 = vpop.f32.mrb[3].mxu0  ;;  %v627_v32 = vadd.f32 %v1855_v22, %v626_v29  ;;  %v2047_v33 = vpop.f32.mrb[3].mxu1 }
 0x1bc   : > { %v516_v34 = vpack.c.bf16 %v513_v28, %v510_v27  ;;  %v630_v35 = vpack.c.bf16 %v627_v32, %v624_v31 }
 0x1be   : > { %517 = vst [vmem:[#allocation2] sm:$0xff] %v516_v34  ;;  %631 = vst [vmem:[#allocation2 + $0x8] sm:$0xff] %v630_v35 }
 0x1bf PF: > { %v2672_v36 = vmov 0.0   ;;  %v2309_v37 = vld [vmem:[#allocation6] ss:$12 sps:$4 sm:$0xff]   ;;  %vm2673_vm1 = vmmov 0   ;;  %v2310_v38 = vld [vmem:[#allocation6 + $0x18] ss:$12 sps:$4 sm:$0xff]  }
 0x1c0   : > { %2048 = vmatprep.subr.bf16.mxu0 %v2672_v36  ;;  %2064 = vmatprep.mubr.msk.bf16.mxu0 %vm2673_vm1, %v2672_v36  ;;  %v2311_v39 = vld [vmem:[#allocation6 + $0x30] ss:$12 sps:$4 sm:$0xff]   ;;  %vm750_vm2 = vcmask 261120   ;;  %v2312_v42 = vld [vmem:[#allocation6 + $0x48] ss:$12 sps:$4 sm:$0xff]   ;;  %s1864_s16 = sshll.u32 %s2641_s11, 3 }
 0x1c1   : > { %2068 = vmatprep.subr.bf16.mxu1 %v2672_v36  ;;  %2070 = vmatprep.mubr.msk.bf16.mxu1 %vm2673_vm1, %v2672_v36  ;;  %v2313_v43 = vld [vmem:[#allocation6 + $0x60] ss:$12 sps:$4 sm:$0xff]   ;;  %v2314_v44 = vld [vmem:[#allocation6 + $0x78] ss:$12 sps:$4 sm:$0xff]   ;;  %v2315_v45 = vld [vmem:[#allocation6 + $0x90] ss:$12 sps:$4 sm:$0xff]   ;;  %s633_s27 = scalar_lea.vmem %s2982_s26, %s1864_s16 [#allocation3] }
 0x1c2   : > { %2049 = vmatpush3.bf16.msra.mxu0 %v2309_v37  ;;  %v2316_v46 = vld [vmem:[#allocation6 + $0xa8] ss:$12 sps:$4 sm:$0xff]   ;;  %s2674_s1 = smov 96   ;;  %s3261_s6 = sld [smem:[#allocation22_spill]]  ;;  %vm798_vm3 = vcmask 130048   ;;  %vm1197_vm4 = vcmask 523264  }
 0x1c3   : > { %2050 = vmatprep.subr.bf16.mxu0 %v2672_v36  ;;  %v3030_v47 = vld [vmem:[%s633_s27] sm:$0xff]  ;;  %s2675_s21 = smov 64   ;;  %s2676_s17 = smov 32   ;;  %vm1199_vm5 = vcmask 785408  }
 0x1c4   : > { %v635_v48 = vpack.c.bf16 %v3030_v47, %v3030_v47  ;;  %s3262_s8 = sld [smem:[#allocation24_spill]]  ;;  %s3263_s20 = sld [smem:[#allocation26_spill]] }
 0x1c5   : > { %v3019_v40 = vld [vmem:[#allocation2] sm:$0xff]  ;;  %v3053_v3 = vld [vmem:[#allocation2 + $0x8] sm:$0xff]  ;;  %s3265_s26 = sld [smem:[#allocation19_spill]] }
 0x1c6   : > { %2051 = vmatpush3.bf16.msra.mxu0 %v2310_v38  ;;  %v755_v41 = vsel %vm750_vm2, %v3019_v40, 0  ;;  %858 = vrot.lane.b32.xlu1 %v3019_v40, %s2674_s1 }
 0x1c7   : > { %2052 = vmatprep.subr.bf16.mxu0 %v2672_v36  ;;  %2069 = vmatpush3.bf16.xpose.msra.mxu1 %v755_v41 }
 0x1c8   : > { %2074 = vmatprep.subr.bf16.mxu1 %v2672_v36  ;;  %v1865_v49 = vld [vmem:[%s3261_s6] ss:$0 sm:$0xff]  ;;  %s3266_s6 = sld [smem:[#allocation27_spill]] }
 0x1ca   : > { %2053 = vmatpush3.bf16.msra.mxu0 %v2311_v39 }
 0x1cb   : > { %2054 = vmatprep.subr.bf16.mxu0 %v2672_v36  ;;  %p3267_p4 = scmp.ne.s32.totalorder %s3265_s26, 0 }
 0x1ce   : > { %2055 = vmatpush3.bf16.msra.mxu0 %v2312_v42 }
 0x1cf   : > { %2056 = vmatprep.subr.bf16.mxu0 %v2672_v36 }
 0x1d2   : > { %2057 = vmatpush3.bf16.msra.mxu0 %v2313_v43 }
 0x1d3   : > { %2058 = vmatprep.subr.bf16.mxu0 %v2672_v36 }
 0x1d6   : > { %2059 = vmatpush3.bf16.msra.mxu0 %v2314_v44 }
 0x1d7   : > { %2060 = vmatprep.subr.bf16.mxu0 %v2672_v36 }
 0x1da   : > { %2061 = vmatpush3.bf16.msra.mxu0 %v2315_v45 }
 0x1db   : > { %2062 = vmatprep.subr.bf16.mxu0 %v2672_v36 }
 0x1de   : > { %2063 = vmatpush3.bf16.msra.mxu0 %v2316_v46 }
 0x1df   : > { %2116 = vmatprep.subr.bf16.mxu0 %v2672_v36 }
 0x1e1   : > { %2065 = vmatmul.mubr.bf16.vlgmr.msra.gmra.mrb[0].mxu0 %v635_v48 }
 0x1e2   : > { %2132 = vmatprep.mubr.msk.bf16.mxu0 %vm2673_vm1, %v2672_v36 }
 0x238   : > { %v859_v7 = vpop.permute.xlu1 %858 }
 0x239   : > { %v864_v8 = vsel %vm750_vm2, %v859_v7, 0 }
 0x2b4   : > { %v741_v50 = vpop.f32.mrb[0].mxu0 }
 0x2b5   : > { %v742_v51 = vadd.f32 %v1865_v49, %v741_v50  ;;  %v2066_v52 = vpop.f32.mrb[1].mxu0 }
 0x2b6   : > { %v744_v53 = vpop.f32.mrb[2].mxu0 }
 0x2b7   : > { %v3043_v54 = vpack.c.bf16 %v742_v51, %v742_v51  ;;  %v2067_v55 = vpop.f32.mrb[3].mxu0 }
 0x2b9   : > { %855 = vrot.lane.b32.xlu1 %v3043_v54, %s2674_s1  ;;  %2071 = vmatmul.mubr.msk.bf16.vlgmr.msra.gmra.mrb[0].mxu1 %vm750_vm2, %v3043_v54 }
 0x2ba   : > { %2076 = vmatprep.mubr.msk.bf16.mxu1 %vm2673_vm1, %v2672_v36  ;;  %2075 = vmatpush3.bf16.msra.mxu1 %v3053_v3 }
 0x2bb   : > { %2080 = vmatprep.subr.bf16.mxu1 %v2672_v36 }
 0x32b   : > { %v856_v10 = vpop.permute.xlu1 %855 }
 0x38c   : > { %v791_v56 = vpop.f32.mrb[0].mxu1 }
 0x38d   : > { %v797_v57 = vmul.f32 0.17677669, %v791_v56  ;;  %v2072_v58 = vpop.f32.mrb[1].mxu1 }
 0x38e   : > { %v794_v59 = vpop.f32.mrb[2].mxu1 }
 0x38f   : > { %v2073_v60 = vpop.f32.mrb[3].mxu1  ;;  %v799_v61 = vsel %vm798_vm3, %v797_v57, -inf }
 0x390   : > { %800 = vmax.xlane.f32.xlu0 %v799_v61 }
 0x41d   : > { %v801_v62 = vpop.xlane.xlu0 %800 }
 0x41e   : > { %v802_v63 = vsub.f32 %v797_v57, %v801_v62 }
 0x420   : > { %v803_v0 = vmul.f32 1.442695, %v802_v63 }
 0x422   : > { %2365 = vpow2.f32 %v803_v0 }
 0x42c   : > { %v2366_v1 = vpop.eup %2365 }
 0x42d   : > { %v805_v2 = vsel %vm798_vm3, %v2366_v1, 0.0 }
 0x42e   : > { %806 = vadd.xlane.f32.xlu0 %v805_v2 }
 0x4bb   : > { %v807_v4 = vpop.xlane.xlu0 %806 }
 0x4bc   : > { %2367 = vrcp.f32 %v807_v4 }
 0x4c6   : > { %v2368_v5 = vpop.eup %2367 }
 0x4c7   : > { %v809_v6 = vmul.f32 %v2368_v5, %v2366_v1 }
 0x4c9   : > { %v810_v9 = vpack.c.bf16 %v809_v6, %v809_v6 }
 0x4cb   : > { %2077 = vmatmul.mubr.msk.bf16.vlgmr.msra.gmra.mrb[4].mxu1 %vm798_vm3, %v810_v9 }
 0x4cc   : > { %2081 = vmatpush3.bf16.xpose.msra.mxu1 %v864_v8  ;;  %2082 = vmatprep.mubr.msk.bf16.mxu1 %vm2673_vm1, %v2672_v36 }
 0x4cd   : > { %2086 = vmatprep.subr.bf16.mxu1 %v2672_v36 }
 0x4d3   : > { %2083 = vmatmul.mubr.msk.bf16.vlgmr.msra.gmra.mrb[8].mxu1 %vm750_vm2, %v856_v10 }
 0x4d4   : > { %2088 = vmatprep.mubr.msk.bf16.mxu1 %vm2673_vm1, %v2672_v36 }
 0x59e   : > { %v3065_v11 = vpop.f32.mrb[4].mxu1 }
 0x59f   : > { %v2078_v12 = vpop.f32.mrb[5].mxu1 }
 0x5a0   : > { %v851_v13 = vpop.f32.mrb[6].mxu1 }
 0x5a1   : > { %v2079_v14 = vpop.f32.mrb[7].mxu1 }
 0x5a6   : > { %v900_v15 = vpop.f32.mrb[8].mxu1 }
 0x5a7   : > { %v906_v16 = vmul.f32 0.17677669, %v900_v15  ;;  %v2084_v17 = vpop.f32.mrb[9].mxu1 }
 0x5a8   : > { %v903_v18 = vpop.f32.mrb[10].mxu1  ;;  %v2318_v17 = vld [vmem:[#allocation8 + $0x8] sm:$0xff]  }
 0x5a9   : > { %v2085_v19 = vpop.f32.mrb[11].mxu1  ;;  %v907_v20 = vsel %vm798_vm3, %v906_v16, -inf  ;;  %v2319_v18 = vld [vmem:[#allocation8 + $0x10] sm:$0xff]  }
 0x5aa   : > { %908 = vmax.xlane.f32.xlu0 %v907_v20  ;;  %v2320_v19 = vld [vmem:[#allocation8 + $0x18] sm:$0xff]   ;;  %v2321_v20 = vld [vmem:[#allocation8 + $0x20] sm:$0xff]  }
 0x5c0   : > { %920 = vrot.lane.b32.xlu0 %v3053_v3, %s2674_s1 }
 0x5c4   : > { %968 = vrot.lane.b32.xlu0 %v3019_v40, %s2675_s21 }
 0x5c8   : > { %966 = vrot.lane.b32.xlu0 %v3043_v54, %s2675_s21 }
 0x637   : > { %v909_v21 = vpop.xlane.xlu0 %908 }
 0x638   : > { %v910_v22 = vsub.f32 %v906_v16, %v909_v21  ;;  %v2322_v21 = vld [vmem:[#allocation8 + $0x28] sm:$0xff]  }
 0x63a   : > { %v911_v23 = vmul.f32 1.442695, %v910_v22  ;;  %v2323_v22 = vld [vmem:[#allocation8 + $0x30] sm:$0xff]  }
 0x63b   : > { %v921_v24 = vpop.permute.xlu0 %920 }
 0x63c   : > { %2369 = vpow2.f32 %v911_v23  ;;  %2087 = vmatpush3.bf16.msra.mxu1 %v921_v24  ;;  %v2324_v23 = vld [vmem:[#allocation8 + $0x38] sm:$0xff]  }
 0x63d   : > { %2092 = vmatprep.subr.bf16.mxu1 %v2672_v36 }
 0x63f   : > { %v969_v30 = vpop.permute.xlu0 %968 }
 0x640   : > { %v974_v31 = vsel %vm750_vm2, %v969_v30, 0 }
 0x643   : > { %v967_v33 = vpop.permute.xlu0 %966 }
 0x646   : > { %v2370_v25 = vpop.eup %2369 }
 0x647   : > { %v913_v26 = vsel %vm798_vm3, %v2370_v25, 0.0 }
 0x648   : > { %914 = vadd.xlane.f32.xlu1 %v913_v26 }
 0x659   : > { %1029 = vrot.lane.b32.xlu1 %v3053_v3, %s2675_s21 }
 0x6d5   : > { %v915_v27 = vpop.xlane.xlu1 %914 }
 0x6d6   : > { %2371 = vrcp.f32 %v915_v27 }
 0x6d9   : > { %v1030_v46 = vpop.permute.xlu1 %1029 }
 0x6e0   : > { %v2372_v28 = vpop.eup %2371 }
 0x6e1   : > { %v917_v29 = vmul.f32 %v2372_v28, %v2370_v25 }
 0x6e3   : > { %v918_v32 = vpack.c.bf16 %v917_v29, %v917_v29 }
 0x6e5   : > { %2089 = vmatmul.mubr.msk.bf16.vlgmr.msra.gmra.mrb[12].mxu1 %vm798_vm3, %v918_v32 }
 0x6e6   : > { %2093 = vmatpush3.bf16.xpose.msra.mxu1 %v974_v31  ;;  %2094 = vmatprep.mubr.msk.bf16.mxu1 %vm2673_vm1, %v2672_v36 }
 0x6e7   : > { %2098 = vmatprep.subr.bf16.mxu1 %v2672_v36 }
 0x6ed   : > { %2095 = vmatmul.mubr.msk.bf16.vlgmr.msra.gmra.mrb[16].mxu1 %vm750_vm2, %v967_v33 }
 0x6ee   : > { %2100 = vmatprep.mubr.msk.bf16.mxu1 %vm2673_vm1, %v2672_v36  ;;  %2099 = vmatpush3.bf16.msra.mxu1 %v1030_v46  ;;  %v2333_v46 = vld [vmem:[#allocation9 + $0x24] ss:$8 sps:$4 sm:$0xff]  }
 0x6ef   : > { %2104 = vmatprep.subr.bf16.mxu1 %v2672_v36 }
 0x7b8   : > { %v960_v34 = vpop.f32.mrb[12].mxu1 }
 0x7b9   : > { %v2090_v35 = vpop.f32.mrb[13].mxu1 }
 0x7ba   : > { %v963_v37 = vpop.f32.mrb[14].mxu1 }
 0x7bb   : > { %v2091_v38 = vpop.f32.mrb[15].mxu1 }
 0x7c0   : > { %v1010_v39 = vpop.f32.mrb[16].mxu1 }
 0x7c1   : > { %v1016_v41 = vmul.f32 0.17677669, %v1010_v39  ;;  %v2096_v42 = vpop.f32.mrb[17].mxu1 }
 0x7c2   : > { %v1013_v43 = vpop.f32.mrb[18].mxu1 }
 0x7c3   : > { %v2097_v44 = vpop.f32.mrb[19].mxu1  ;;  %v1017_v45 = vsel %vm798_vm3, %v1016_v41, -inf  ;;  %v2325_v43 = vld [vmem:[#allocation9] ss:$8 sps:$4 sm:$0xff]  }
 0x7c4   : > { %1018 = vmax.xlane.f32.xlu0 %v1017_v45  ;;  %v2327_v44 = vld [vmem:[#allocation9 + $0x4] ss:$8 sps:$4 sm:$0xff]   ;;  %v2328_v45 = vld [vmem:[#allocation9 + $0x10] ss:$8 sps:$4 sm:$0xff]  }
 0x851   : > { %v1019_v48 = vpop.xlane.xlu0 %1018 }
 0x852   : > { %v1020_v49 = vsub.f32 %v1016_v41, %v1019_v48  ;;  %v2331_v48 = vld [vmem:[#allocation9 + $0x20] ss:$8 sps:$4 sm:$0xff]  }
 0x854   : > { %v1021_v50 = vmul.f32 1.442695, %v1020_v49 }
 0x856   : > { %2373 = vpow2.f32 %v1021_v50 }
 0x860   : > { %v2374_v51 = vpop.eup %2373 }
 0x861   : > { %v1023_v52 = vsel %vm798_vm3, %v2374_v51, 0.0 }
 0x862   : > { %1024 = vadd.xlane.f32.xlu1 %v1023_v52 }
 0x873   : > { %1077 = vrot.lane.b32.xlu1 %v3019_v40, %s2676_s17 }
 0x877   : > { %1075 = vrot.lane.b32.xlu1 %v3043_v54, %s2676_s17 }
 0x8ef   : > { %v1025_v53 = vpop.xlane.xlu1 %1024 }
 0x8f0   : > { %2375 = vrcp.f32 %v1025_v53  ;;  %v2336_v53 = vld [vmem:[#allocation9 + $0x34] ss:$8 sps:$4 sm:$0xff]  }
 0x8f3   : > { %v1078_v57 = vpop.permute.xlu1 %1077 }
 0x8f4   : > { %v1083_v58 = vsel %vm750_vm2, %v1078_v57, 0  ;;  %v2342_v57 = vld [vmem:[#allocation9 + $0x54] ss:$8 sps:$4 sm:$0xff]  }
 0x8f7   : > { %v1076_v60 = vpop.permute.xlu1 %1075 }
 0x8fa   : > { %v2376_v55 = vpop.eup %2375 }
 0x8fb   : > { %v1027_v56 = vmul.f32 %v2376_v55, %v2374_v51  ;;  %v2339_v55 = vld [vmem:[#allocation9 + $0x44] ss:$8 sps:$4 sm:$0xff]  }
 0x8fd   : > { %v1028_v59 = vpack.c.bf16 %v1027_v56, %v1027_v56  ;;  %v2337_v56 = vld [vmem:[#allocation9 + $0x40] ss:$8 sps:$4 sm:$0xff]  }
 0x8ff   : > { %2101 = vmatmul.mubr.msk.bf16.vlgmr.msra.gmra.mrb[20].mxu1 %vm798_vm3, %v1028_v59  ;;  %v2345_v59 = vld [vmem:[#allocation9 + $0x64] ss:$8 sps:$4 sm:$0xff]  }
 0x900   : > { %2105 = vmatpush3.bf16.xpose.msra.mxu1 %v1083_v58  ;;  %2106 = vmatprep.mubr.msk.bf16.mxu1 %vm2673_vm1, %v2672_v36  ;;  %v2340_v58 = vld [vmem:[#allocation9 + $0x50] ss:$8 sps:$4 sm:$0xff]  }
 0x901   : > { %2110 = vmatprep.subr.bf16.mxu1 %v2672_v36 }
 0x907   : > { %2107 = vmatmul.mubr.msk.bf16.vlgmr.msra.gmra.mrb[24].mxu1 %vm750_vm2, %v1076_v60  ;;  %v2343_v60 = vld [vmem:[#allocation9 + $0x60] ss:$8 sps:$4 sm:$0xff]  }
 0x908   : > { %2112 = vmatprep.mubr.msk.bf16.mxu1 %vm2673_vm1, %v2672_v36 }
 0x9d2   : > { %v1069_v40 = vpop.f32.mrb[20].mxu1 }
 0x9d3   : > { %v2102_v54 = vpop.f32.mrb[21].mxu1 }
 0x9d4   : > { %v1072_v61 = vpop.f32.mrb[22].mxu1  ;;  %v2346_v54 = vld [vmem:[#allocation9 + $0x70] ss:$8 sps:$4 sm:$0xff]  }
 0x9d5   : > { %v2103_v62 = vpop.f32.mrb[23].mxu1  ;;  %v2677_v61 = vmov 0  }
 0x9d6   : > { %v2349_v62 = vld [vmem:[#allocation11 + $0x40] sm:$0xff]  }
 0x9da   : > { %v1119_v63 = vpop.f32.mrb[24].mxu1 }
 0x9db   : > { %v1125_v0 = vmul.f32 0.17677669, %v1119_v63  ;;  %v2108_v1 = vpop.f32.mrb[25].mxu1  ;;  %v2350_v63 = vld [vmem:[#allocation11] sm:$0xff]  }
 0x9dc   : > { %v1122_v2 = vpop.f32.mrb[26].mxu1  ;;  %v2352_v1 = vld [vmem:[#allocation11 + $0x8] sm:$0xff]  }
 0x9dd   : > { %v2109_v4 = vpop.f32.mrb[27].mxu1  ;;  %v1126_v5 = vsel %vm798_vm3, %v1125_v0, -inf  ;;  %v2353_v2 = vld [vmem:[#allocation11 + $0x50] sm:$0xff]  }
 0x9de   : > { %1127 = vmax.xlane.f32.xlu0 %v1126_v5  ;;  %v2354_v4 = vld [vmem:[#allocation11 + $0x10] sm:$0xff]   ;;  %v2355_v5 = vld [vmem:[#allocation11 + $0x58] sm:$0xff]  }
 0x9f4   : > { %1138 = vrot.lane.b32.xlu0 %v3053_v3, %s2676_s17  ;;  %v2317_v3 = vld [vmem:[#allocation8] sm:$0xff]  }
 0x9f5   : > { %2117 = vmatpush3.bf16.msra.mxu0 %v2317_v3 }
 0x9f6   : > { %2118 = vmatprep.subr.bf16.mxu0 %v2672_v36 }
 0x9f8   : > { %1185 = vrot.lane.b32.xlu0 %v960_v34, %s2676_s17 }
 0x9f9   : > { %2119 = vmatpush3.bf16.msra.mxu0 %v2318_v17  ;;  %v1892_v17 = vld [vmem:[%s3262_s8 + $0x2] ss:$0 sm:$0xff] }
 0x9fa   : > { %2120 = vmatprep.subr.bf16.mxu0 %v2672_v36 }
 0x9fc   : > { %1189 = vrot.lane.b32.xlu0 %v1069_v40, %s2675_s21  ;;  %v2348_v40 = vld [vmem:[#allocation9 + $0x74] ss:$8 sps:$4 sm:$0xff]   ;;  %s3264_s21 = sld [smem:[#allocation18_spill]] }
 0x9fd   : > { %2121 = vmatpush3.bf16.msra.mxu0 %v2319_v18 }
 0x9fe   : > { %2122 = vmatprep.subr.bf16.mxu0 %v2672_v36 }
 0xa01   : > { %2123 = vmatpush3.bf16.msra.mxu0 %v2320_v19 }
 0xa02   : > { %2124 = vmatprep.subr.bf16.mxu0 %v2672_v36  ;;  %s1929_s17 = sshll.u32 %s3264_s21, 1 }
 0xa03   : > { %s1700_s18 = sadd.s32 %s2641_s11, %s1929_s17  ;;  %s1689_s11 = scalar_lea.sflag [#allocation5], %s393_s5 }
 0xa04   : > { %s1930_s27 = sshll.u32 %s1700_s18, 7  ;;  %s2678_s18 = smov [#allocation12]  }
 0xa05   : > { %2125 = vmatpush3.bf16.msra.mxu0 %v2321_v20  ;;  %s3143_s21 = scalar_lea.hbm %s3266_s6, %s1930_s27  ;;  %s2531_s2 = sshll.u32 %s2678_s18, 4  ;;  %s2532_s2 = int_to_ptr.vmem [resolvable:$false] %s2531_s2 }
 0xa06   : > { %2126 = vmatprep.subr.bf16.mxu0 %v2672_v36  ;;  %s2533_s4 = scalar_lea.vmem %s2532_s2, 256 }
 0xa09   : > { %2127 = vmatpush3.bf16.msra.mxu0 %v2322_v21  ;;  %v2361_v21 = vld [vmem:[#allocation11 + $0x70] sm:$0xff]  }
 0xa0a   : > { %2128 = vmatprep.subr.bf16.mxu0 %v2672_v36 }
 0xa0d   : > { %2129 = vmatpush3.bf16.msra.mxu0 %v2323_v22  ;;  %v2362_v22 = vld [vmem:[#allocation11 + $0x30] sm:$0xff]  }
 0xa0e   : > { %2130 = vmatprep.subr.bf16.mxu0 %v2672_v36  ;;  %v1882_v36 = vld [vmem:[%s3262_s8] ss:$0 sm:$0xff] }
 0xa11   : > { %2131 = vmatpush3.bf16.msra.mxu0 %v2324_v23  ;;  %v2363_v23 = vld [vmem:[#allocation11 + $0x78] sm:$0xff]  }
 0xa12   : > { %1986 = vmatprep.subr.bf16.mxu0 %v2349_v62 }
 0xa6b   : > { %v1128_v6 = vpop.xlane.xlu0 %1127 }
 0xa6c   : > { %v1129_v7 = vsub.f32 %v1125_v0, %v1128_v6  ;;  %v2351_v0 = vld [vmem:[#allocation11 + $0x48] sm:$0xff]   ;;  %v2356_v6 = vld [vmem:[#allocation11 + $0x18] sm:$0xff]  }
 0xa6e   : > { %v1130_v8 = vmul.f32 1.442695, %v1129_v7  ;;  %v2357_v7 = vld [vmem:[#allocation11 + $0x60] sm:$0xff]  }
 0xa6f   : > { %v1139_v9 = vpop.permute.xlu0 %1138 }
 0xa70   : > { %2377 = vpow2.f32 %v1130_v8  ;;  %2111 = vmatpush3.bf16.msra.mxu1 %v1139_v9  ;;  %v2358_v8 = vld [vmem:[#allocation11 + $0x20] sm:$0xff]   ;;  %v2359_v9 = vld [vmem:[#allocation11 + $0x68] sm:$0xff]  }
 0xa71   : > { %1445 = vmatprep.subr.bf16.mxu1 %v2327_v44  ;;  %v1909_v44 = vld [vmem:[%s3262_s8 + $0x3] ss:$0 sm:$0xff] }
 0xa73   : > { %v1186_v28 = vpop.permute.xlu0 %1185 }
 0xa74   : > { %v1196_v30 = vsel %vm750_vm2, %v3065_v11, %v1186_v28  ;;  %v2330_v11 = vld [vmem:[#allocation9 + $0x14] ss:$8 sps:$4 sm:$0xff]   ;;  %v1353_v28 = vld [vmem:[%s3263_s20] sm:$0x3] }
 0xa77   : > { %v1190_v29 = vpop.permute.xlu0 %1189 }
 0xa78   : > { %v1198_v31 = vsel %vm1197_vm4, %v1196_v30, %v1190_v29 }
 0xa7a   : > { %v2378_v10 = vpop.eup %2377 }
 0xa7b   : > { %v1132_v12 = vsel %vm798_vm3, %v2378_v10, 0.0 }
 0xa7c   : > { %1133 = vadd.xlane.f32.xlu1 %v1132_v12 }
 0xb09   : > { %v1134_v13 = vpop.xlane.xlu1 %1133 }
 0xb0a   : > { %2379 = vrcp.f32 %v1134_v13 }
 0xb14   : > { %v2380_v14 = vpop.eup %2379 }
 0xb15   : > { %v1136_v15 = vmul.f32 %v2380_v14, %v2378_v10  ;;  %v2360_v10 = vld [vmem:[#allocation11 + $0x28] sm:$0xff]  }
 0xb17   : > { %v1137_v16 = vpack.c.bf16 %v1136_v15, %v1136_v15 }
 0xb19   : > { %2113 = vmatmul.mubr.msk.bf16.vlgmr.msra.gmra.mrb[28].mxu1 %vm798_vm3, %v1137_v16  ;;  %v1891_v16 = vld [vmem:[%s3262_s8 + $0x1] ss:$0 sm:$0xff] }
 0xb1a   : > { %1446 = vmatpush1.bf16.msra.mxu1 %v2325_v43  ;;  %1477 = vmatprep.mubr.bf16.mxu1 %v2677_v61 }
 0xb1b   : > { %1447 = vmatprep.subr.bf16.mxu1 %v2330_v11 }
 0xb1e   : > { %1448 = vmatpush1.bf16.msra.mxu1 %v2328_v45 }
 0xb1f   : > { %1449 = vmatprep.subr.bf16.mxu1 %v2333_v46 }
 0xb22   : > { %1450 = vmatpush1.bf16.msra.mxu1 %v2331_v48 }
 0xb23   : > { %1451 = vmatprep.subr.bf16.mxu1 %v2336_v53 }
 0xbec   : > { %v1178_v24 = vpop.f32.mrb[28].mxu1 }
 0xbed   : > { %1193 = vrot.lane.b32.xlu0 %v1178_v24, %s2674_s1  ;;  %v2114_v25 = vpop.f32.mrb[29].mxu1  ;;  %v2364_v24 = vld [vmem:[#allocation11 + $0x38] sm:$0xff]   ;;  %s1704_s1 = sshll.u32 %s395_s19, 4  ;;  %s3145_s1 = int_to_ptr.vmem [resolvable:$true] %s1704_s1 }
 0xbee   : > { %v1181_v26 = vpop.f32.mrb[30].mxu1  ;;  %v1355_v25 = vlaneseq  ;;  %s2527_s17 = scalar_lea.vmem %s3145_s1, 128  ;;  %p2534_p10 = scmp.lt.s32.totalorder %s3145_s1, %s2532_s2 }
 0xbef   : > { %v2115_v27 = vpop.f32.mrb[31].mxu1  ;;  %p2528_p1 = scmp.ne.s32.totalorder %s3145_s1, %s2527_s17  ;;  %p2535_p11 = scmp.lt.s32.totalorder %s2533_s4, %s2527_s17 }
 0xbf0   : > { %v1356_v26 = vshrl.u32 %v1355_v25, 7 }
 0xbf1   : > { %p2529_p6 = pnand %p2528_p1, %p3267_p4  ;;  %p2536_p5 = por %p2535_p11, %p2534_p10 }
 0xbf2   : > { %v1357_v27 = vsub.s32 0, %v1356_v26  ;;  %v1361_v29 = vsub.s32 1, %v1356_v26 }
 0xbf3   : > { %p2530_p13 = pneg %p2529_p6 }
 0xbf4   : > { %v1358_v30 = vrot.slane %v1353_v28, %v1357_v27 }
 0xbf5   : > { %p2537_p8 = pnand %p2536_p5, %p2530_p13 }
 0xc5f   : > { %v1194_v32 = vpop.permute.xlu0 %1193 }
 0xc60   : > { %v1200_v33 = vsel %vm1199_vm5, %v1198_v31, %v1194_v32  ;;  %v1362_v31 = vrot.slane %v1353_v28, %v1361_v29 }
 0xc61   : > { %v1201_v34 = vpack.c.bf16 %v1200_v33, %v1200_v33 }
 0xc63   : > { %2133 = vmatmul.mubr.bf16.vlgmr.msra.gmra.mrb[4].mxu0 %v1201_v34 }
 0xc64   : > { %1987 = vmatpush3.bf16.msra.mxu0 %v2350_v63 }
 0xc65   : > { %1988 = vmatprep.subr.bf16.mxu0 %v2351_v0 }
 0xc68   : > { %1989 = vmatpush3.bf16.msra.mxu0 %v2352_v1 }
 0xc69   : > { %1990 = vmatprep.subr.bf16.mxu0 %v2353_v2 }
 0xc6c   : > { %1991 = vmatpush3.bf16.msra.mxu0 %v2354_v4 }
 0xc6d   : > { %1992 = vmatprep.subr.bf16.mxu0 %v2355_v5 }
 0xc70   : > { %1993 = vmatpush3.bf16.msra.mxu0 %v2356_v6 }
 0xc71   : > { %1994 = vmatprep.subr.bf16.mxu0 %v2357_v7 }
 0xc74   : > { %1995 = vmatpush3.bf16.msra.mxu0 %v2358_v8 }
 0xc75   : > { %1996 = vmatprep.subr.bf16.mxu0 %v2359_v9 }
 0xc78   : > { %1997 = vmatpush3.bf16.msra.mxu0 %v2360_v10 }
 0xc79   : > { %1998 = vmatprep.subr.bf16.mxu0 %v2361_v21 }
 0xc7c   : > { %1999 = vmatpush3.bf16.msra.mxu0 %v2362_v22 }
 0xc7d   : > { %2000 = vmatprep.subr.bf16.mxu0 %v2363_v23 }
 0xc80   : > { %2001 = vmatpush3.bf16.msra.mxu0 %v2364_v24 }
 0xd36   : > { %v1305_v35 = vpop.f32.mrb[4].mxu0 }
 0xd37   : > { %v1306_v37 = vadd.f32 %v1882_v36, %v1305_v35  ;;  %v2134_v38 = vpop.f32.mrb[5].mxu0 }
 0xd38   : > { %v1308_v39 = vpop.f32.mrb[6].mxu0 }
 0xd39   : > { %v2135_v41 = vpop.f32.mrb[7].mxu0  ;;  %v1311_v42 = vadd.f32 %v1306_v37, %v3030_v47  ;;  %v2334_v47 = vld [vmem:[#allocation9 + $0x30] ss:$8 sps:$4 sm:$0xff]  }
 0xd3a   : > { %1452 = vmatpush1.bf16.msra.mxu1 %v2334_v47 }
 0xd3b   : > { %1314 = vadd.xlane.f32.xlu1 %v1311_v42  ;;  %1453 = vmatprep.subr.bf16.mxu1 %v2339_v55 }
 0xd3e   : > { %1454 = vmatpush1.bf16.msra.mxu1 %v2337_v56 }
 0xd3f   : > { %1455 = vmatprep.subr.bf16.mxu1 %v2342_v57 }
 0xd42   : > { %1456 = vmatpush1.bf16.msra.mxu1 %v2340_v58 }
 0xd43   : > { %1457 = vmatprep.subr.bf16.mxu1 %v2345_v59  ;;  %v1926_v59 = vld [vmem:[%s3262_s8 + $0x4] ss:$0 sm:$0xff] }
 0xd46   : > { %1458 = vmatpush1.bf16.msra.mxu1 %v2343_v60 }
 0xd47   : > { %1459 = vmatprep.subr.bf16.mxu1 %v2348_v40  ;;  %v1927_v40 = vld [vmem:[%s3262_s8 + $0x5] ss:$0 sm:$0xff] }
 0xd4a   : > { %1460 = vmatpush1.bf16.msra.mxu1 %v2346_v54 }
 0xdc8   : > { %v1315_v49 = vpop.xlane.xlu1 %1314 }
 0xdc9   : > { %v1317_v50 = vmul.f32 0.0078125, %v1315_v49 }
 0xdcb   : > { %v1318_v51 = vsub.f32 %v1311_v42, %v1317_v50 }
 0xdcd   : > { %v1319_v52 = vmul.f32 %v1318_v51, %v1318_v51 }
 0xdcf   : > { %1320 = vadd.xlane.f32.xlu0 %v1319_v52 }
 0xe5c   : > { %v1321_v12 = vpop.xlane.xlu0 %1320 }
 0xe5d   : > { %v1322_v13 = vmul.f32 0.0078125, %v1321_v12 }
 0xe5f   : > { %v1323_v14 = vadd.f32 1e-05, %v1322_v13 }
 0xe61   : > { %2381 = vrsqrt.f32 %v1323_v14 }
 0xe6b   : > { %v2382_v15 = vpop.eup %2381 }
 0xe6c   : > { %v1325_v3 = vmul.f32 %v2382_v15, %v1318_v51 }
 0xe6e   : > { %v1330_v18 = vmul.f32 %v1891_v16, %v1325_v3 }
 0xe70   : > { %v1335_v19 = vadd.f32 %v1892_v17, %v1330_v18 }
 0xe72   : > { %v1336_v20 = vpack.c.bf16 %v1335_v19, %v1335_v19 }
 0xe74   : > { %1478 = vmatmul.mubr.bf16.vlgmr.msra.gmra.mrb[32].mxu1 %v1336_v20 }
 0xf47   : > { %v1479_v32 = vpop.f32.mrb[32].mxu1 }
 0xf48   : > { %v1480_v33 = vadd.f32 %v1479_v32, %v1358_v30  ;;  %v1481_v34 = vpop.f32.mrb[33].mxu1 }
 0xf49   : > { %v1482_v36 = vadd.f32 %v1481_v34, %v1362_v31  ;;  %v1483_v35 = vpop.f32.mrb[34].mxu1 }
 0xf4a   : > { %v1486_v37 = vmax.f32 %v1480_v33, 0.0  ;;  %v1484_v38 = vpop.f32.mrb[35].mxu1 }
 0xf4b   : > { %v1487_v39 = vmax.f32 %v1482_v36, 0.0 }
 0xf4c   : > { %v1488_v42 = vpack.c.bf16 %v1486_v37, %v1486_v37 }
 0xf4d   : > { %v1489_v41 = vpack.c.bf16 %v1487_v39, %v1487_v39 }
 0xf4f   : > { %1655 = vmatprep.mubr.bf16.mxu0 %v1489_v41 }
 0xf50   : > { %1656 = vmatmul.mubr.bf16.vlgmr.msra.gmra.mrb[8].mxu0 %v1488_v42 }
0x1023   : > { %v2002_v43 = vpop.f32.mrb[8].mxu0 }
0x1024   : > { %v2003_v11 = vpop.f32.mrb[9].mxu0 }
0x1025   : > { %v2004_v45 = vadd.f32 %v2003_v11, %v2002_v43  ;;  %v2005_v46 = vpop.f32.mrb[10].mxu0 }
0x1026   : > { %v2006_v48 = vpop.f32.mrb[11].mxu0 }
0x1027   : > { %v1658_v49 = vadd.f32 %v2004_v45, %v1909_v44 }
0x1029   : > { %v1663_v50 = vadd.f32 %v1658_v49, %v1335_v19 }
0x102b   : > { %1666 = vadd.xlane.f32.xlu1 %v1663_v50 }
0x10b8   : > { %v1667_v51 = vpop.xlane.xlu1 %1666 }
0x10b9   : > { %v1668_v52 = vmul.f32 0.0078125, %v1667_v51 }
0x10bb   : > { %v1669_v53 = vsub.f32 %v1663_v50, %v1668_v52 }
0x10bd   : > { %v1670_v47 = vmul.f32 %v1669_v53, %v1669_v53 }
0x10bf   : > { %1671 = vadd.xlane.f32.xlu1 %v1670_v47 }
0x114c   : > { %v1672_v55 = vpop.xlane.xlu1 %1671 }
0x114d   : > { %v1673_v56 = vmul.f32 0.0078125, %v1672_v55 }
0x114f   : > { %v1674_v57 = vadd.f32 1e-05, %v1673_v56 }
0x1151   : > { %2383 = vrsqrt.f32 %v1674_v57 }
0x115b   : > { %v2384_v58 = vpop.eup %2383 }
0x115c   : > { %v1676_v60 = vmul.f32 %v2384_v58, %v1669_v53 }
0x115e   : > { %v1681_v54 = vmul.f32 %v1926_v59, %v1676_v60 }
0x1160   : > { %v1686_v61 = vadd.f32 %v1927_v40, %v1681_v54 }
0x1162   : > { %1687 = vst [vmem:[%s395_s19] sm:$0xff] %v1686_v61 }
0x1163   : > { %2540 = shalt.err (!%p2537_p8)
}
0x1164   : > { %s2541_s5 = scalar_lea.hbm %s3143_s21, 128  ;;  %s2545_s12 = scalar_lea.hbm %s3266_s6, 512 }
0x1165   : > { %p2542_p12 = scmp.ne.s32.totalorder %s3143_s21, %s2541_s5  ;;  %p2546_p9 = scmp.lt.u32.totalorder %s3143_s21, %s3266_s6 }
0x1166   : > { %p2547_p0 = scmp.lt.u32.totalorder %s2545_s12, %s2541_s5  ;;  %p2549_p1 = scmp.lt.u32.totalorder %s2541_s5, %s3143_s21 }
0x1167   : > { %p2543_p2 = pnand %p2542_p12, %p3267_p4 }
0x1168   : > { %p2548_p3 = por %p2547_p0, %p2546_p9 }
0x1169   : > { %p2544_p7 = pneg %p2543_p2 }
0x116a   : > { %p2550_p6 = por %p2549_p1, %p2548_p3 }
0x116c   : > { %p2551_p13 = pnand %p2550_p6, %p2544_p7 }
0x116e   : > { %2554 = shalt.err (!%p2551_p13)
}
0x116f   : > { %2154 = dma.vmem_to_hbm [thread:$0]  (%p3267_p4), %s3145_s1, 128, %s3143_s21, %s1689_s11  }
0x1170 PF: > { %s3268_s20 = sld [smem:[#allocation17_spill]]  ;;  %s3269_s3 = sld [smem:[#allocation20_spill]] }
0x1171   : > { %p2186_p10 = scmp.ge.s32.totalorder %s2657_s15, 2 }
0x1176   : > { %s1716_s17 = sand.u32 1, %s3268_s20   ;;  %p3270_p11 = scmp.ne.s32.totalorder %s3269_s3, 0 }
0x1177   : > { %s1717_s18 = scalar_lea.sflag [#allocation5], %s1716_s17 }
0x1178   : > { %p2174_p5 = pnand %p2186_p10, %p3270_p11 }
0x117a   : > { %2612 = dma.done.wait (!%p2174_p5), %s1717_s18, 128  }
0x117b   : > { %2614 = vsyncadd (!%p2174_p5), %s1717_s18, 4294967168  ;;  %s26_s15 = sadd.s32 1, %s2657_s15   ;;  %s3271_s27 = smov %s2621_s28 }
0x117c   : > { %p23_p8 = scmp.ge.s32.totalorder %s26_s15, 6   ;;  %s3272_s28 = smov %s2625_s29 }
0x117d   : > { %s3273_s29 = smov %s2931_s30  ;;  %s3274_s30 = smov %s2633_s9 }
0x117e   : > { %s3275_s9 = smov %s2637_s10  ;;  %s3276_s10 = smov %s2928_s24 }
0x117f   : > { %s3277_s11 = smov %s2649_s13  ;;  %s3278_s12 = smov %s2653_s14 }
0x1180   : > { %s3279_s13 = smov %s3282_s23  ;;  %s3280_s14 = smov %s3286_s25 }
0x1181   :  { %25 = sbr.rel (!%p23_p8) target bundleno = 19 (0x13), region = 118 }
0x1188   :  { %1722 = vsyncpa [#allocation4], 1 }
0x1189   :  { %1724 = vsyncpa [#allocation4 + $0x1], 1 }
0x118a   :  { %1725 = vsyncpa [#allocation7], 1 }
0x118b   :  { %1726 = vsyncpa [#allocation10], 1 }
0x118c   :  { %1727 = vsyncpa [#allocation5], 1 }
0x118d   :  { %1729 = vsyncpa [#allocation5 + $0x1], 1 }

</bundles_post_ra>
